<compile_context>
chip_gen: v6e
topology: v6e:2x2x1
jax: 0.10.0
libtpu: 0.0.40
codegen_flags: <defaults>
</compile_context>

<pallas_src>
import functools

import jax
import jax.numpy as jnp
import numpy as np
from jax import lax
from jax.experimental import pallas as pl
from jax.experimental.pallas import tpu as pltpu


def _slim_block_kernel(x_ref, w_ref, b_ref, a_ref, o_ref, *, C, CIN_G, WP, HWP):
    """One batch element.

    x_ref : (1, C, HWP) VMEM  ghost-padded activations, flat spatial on lanes
    w_ref : (C*CIN_G*9,) SMEM conv weights, flat [co, ci_in_group, tap]
    b_ref : (C,) SMEM         conv bias
    a_ref : (C,) SMEM         CustomActivation alpha
    o_ref : (1, C, HWP) VMEM
    """
    x = x_ref[0]                                            # (C, HWP) f32

    accs = [jnp.zeros((1, HWP), jnp.float32) for _ in range(C)]
    k = 0
    for dy in (-1, 0, 1):
        for dx in (-1, 0, 1):
            s = dy * WP + dx
            # Ghost zero padding makes every tap a plain lane roll: wrapped /
            # out-of-image reads land on zeros, so no masks are needed.
            xs = x if s == 0 else pltpu.roll(x, shift=(-s) % HWP, axis=1)
            xrow = [xs[ci:ci + 1, :] for ci in range(C)]    # (1, HWP) rows
            for co in range(C):
                g = co // CIN_G
                for j in range(CIN_G):
                    wv = w_ref[(co * CIN_G + j) * 9 + k]    # SMEM scalar
                    accs[co] = accs[co] + wv * xrow[g * CIN_G + j]
            k += 1

    rows = []
    for co in range(C):
        conv = accs[co] + b_ref[co]                         # bias (SMEM scalar)
        z = a_ref[co] * conv
        act = conv * (1.0 / (1.0 + jnp.exp(-z)))            # x * sigmoid(alpha*x)
        rows.append(act + x[co:co + 1, :])                  # residual add
    o_ref[0] = jnp.concatenate(rows, axis=0).astype(o_ref.dtype)


@jax.jit
def slim_block(x, weight, bias, alpha):
    """SlimBlock forward.

    x:      (N, C, H, W) float32
    weight: (C, C//2, 3, 3) float32  (Conv2d, groups=2)
    bias:   (C,) float32
    alpha:  (1, C, 1, 1) float32
    """
    N, C, H, W = x.shape
    G = 2
    cin_g = C // G
    WP, HP = W + 1, H + 2                                   # ghost-padded grid
    HWR = HP * WP                                           # raw flat spatial
    HWP = ((HWR + 127) // 128) * 128                        # lane-dense pad

    # Ghost zero-pad (1 row top/bottom, 1 column appended per row), flatten the
    # spatial axes onto lanes.  NCHW needs NO transpose for this layout.
    x_slab = jnp.pad(x.astype(jnp.float32),
                     ((0, 0), (0, 0), (1, 1), (0, 1))).reshape(N, C, HWR)
    x_slab = jnp.pad(x_slab, ((0, 0), (0, 0), (0, HWP - HWR)))

    # Flat scalar tables for SMEM.
    w_flat = weight.astype(jnp.float32).reshape(C * cin_g * 9)
    b_vec = bias.astype(jnp.float32).reshape(C)
    a_vec = alpha.astype(jnp.float32).reshape(C)

    kernel = functools.partial(_slim_block_kernel,
                               C=C, CIN_G=cin_g, WP=WP, HWP=HWP)
    out_slab = pl.pallas_call(
        kernel,
        out_shape=jax.ShapeDtypeStruct((N, C, HWP), jnp.float32),
        grid_spec=pltpu.PrefetchScalarGridSpec(
            num_scalar_prefetch=0,
            grid=(N,),
            in_specs=[
                pl.BlockSpec((1, C, HWP), lambda n: (n, 0, 0)),
                pl.BlockSpec(memory_space=pltpu.MemorySpace.SMEM),
                pl.BlockSpec(memory_space=pltpu.MemorySpace.SMEM),
                pl.BlockSpec(memory_space=pltpu.MemorySpace.SMEM),
            ],
            out_specs=pl.BlockSpec((1, C, HWP), lambda n: (n, 0, 0)),
        ),
        compiler_params=pltpu.CompilerParams(
            dimension_semantics=("parallel",)),
    )(x_slab, w_flat, b_vec, a_vec)

    # Drop lane padding and ghost rows/column.
    out = out_slab[:, :, :HWR].reshape(N, C, HP, WP)[:, :, 1:1 + H, :W]
    return out.astype(x.dtype)


def ref_forward(x, weight, bias, alpha):
    """Pure-JAX reference identical to the PyTorch SlimBlock forward."""
    conv = lax.conv_general_dilated(
        x, weight, window_strides=(1, 1), padding=((1, 1), (1, 1)),
        dimension_numbers=("NCHW", "OIHW", "NCHW"),
        feature_group_count=2, precision=lax.Precision.HIGHEST)
    conv = conv + bias.reshape(1, -1, 1, 1)
    act = conv * jax.nn.sigmoid(alpha.reshape(1, -1, 1, 1) * conv)
    return act + x


if __name__ == "__main__":
    N, C, H, W = 2, 4, 16, 16

    key = jax.random.PRNGKey(0)
    kx, kw, kb, ka = jax.random.split(key, 4)
    x = jax.random.normal(kx, (N, C, H, W), dtype=jnp.float32)
    weight = jax.random.normal(kw, (C, C // 2, 3, 3), dtype=jnp.float32) * 0.3
    bias = jax.random.normal(kb, (C,), dtype=jnp.float32) * 0.1
    alpha = jax.random.normal(ka, (1, C, 1, 1), dtype=jnp.float32)

    out = jax.block_until_ready(slim_block(x, weight, bias, alpha))
    ref = jax.block_until_ready(ref_forward(x, weight, bias, alpha))

    np.testing.assert_allclose(np.asarray(out), np.asarray(ref),
                               rtol=1e-5, atol=1e-5)
    print("KERNEL_OK")
</pallas_src>

<mosaic_0001>
module attributes {stable_mosaic.version = 11 : i64} {
  func.func @_slim_block_kernel(%arg0: i32, %arg1: memref<1x4x384xf32, #tpu.memory_space<vmem>>, %arg2: memref<72xf32, #tpu.memory_space<smem>>, %arg3: memref<4xf32, #tpu.memory_space<smem>>, %arg4: memref<4xf32, #tpu.memory_space<smem>>, %arg5: memref<1x4x384xf32, #tpu.memory_space<vmem>>) attributes {dimension_semantics = [#tpu.dimension_semantics<parallel>], iteration_bounds = array<i64: 2>, scalar_prefetch = 0 : i64, scratch_operands = 0 : i64, tpu.core_type = #tpu.core_type<tc>, window_params = [{transform_indices = @transform_0, window_bounds = array<i64: 1, 4, 384>}, {transform_indices = @transform_1, window_bounds = array<i64: 72>}, {transform_indices = @transform_2, window_bounds = array<i64: 4>}, {transform_indices = @transform_3, window_bounds = array<i64: 4>}, {transform_indices = @transform_4, window_bounds = array<i64: 1, 4, 384>}]} {
    %c0 = arith.constant 0 : index
    %c0_0 = arith.constant 0 : index
    %c0_1 = arith.constant 0 : index
    %0 = vector.load %arg1[%c0, %c0_0, %c0_1] : memref<1x4x384xf32, #tpu.memory_space<vmem>>, vector<1x4x384xf32>
    %1 = vector.shape_cast %0 : vector<1x4x384xf32> to vector<4x384xf32>
    %cst = arith.constant 0.000000e+00 : f32
    %2 = vector.broadcast %cst : f32 to vector<1x384xf32>
    %cst_2 = arith.constant 0.000000e+00 : f32
    %3 = vector.broadcast %cst_2 : f32 to vector<1x384xf32>
    %cst_3 = arith.constant 0.000000e+00 : f32
    %4 = vector.broadcast %cst_3 : f32 to vector<1x384xf32>
    %cst_4 = arith.constant 0.000000e+00 : f32
    %5 = vector.broadcast %cst_4 : f32 to vector<1x384xf32>
    %c18_i32 = arith.constant 18 : i32
    %6 = tpu.dynamic_rotate %1 by %c18_i32 dim 1 : vector<4x384xf32>, i32 -> vector<4x384xf32>
    %7 = vector.extract_strided_slice %6 {offsets = [0, 0], sizes = [1, 384], strides = [1, 1]} : vector<4x384xf32> to vector<1x384xf32>
    %8 = vector.extract_strided_slice %6 {offsets = [1, 0], sizes = [1, 384], strides = [1, 1]} : vector<4x384xf32> to vector<1x384xf32>
    %9 = vector.extract_strided_slice %6 {offsets = [2, 0], sizes = [1, 384], strides = [1, 1]} : vector<4x384xf32> to vector<1x384xf32>
    %10 = vector.extract_strided_slice %6 {offsets = [3, 0], sizes = [1, 384], strides = [1, 1]} : vector<4x384xf32> to vector<1x384xf32>
    %c0_5 = arith.constant 0 : index
    %11 = memref.load %arg2[%c0_5] : memref<72xf32, #tpu.memory_space<smem>>
    %12 = vector.broadcast %11 : f32 to vector<1x384xf32>
    %13 = arith.mulf %12, %7 : vector<1x384xf32>
    %14 = arith.addf %2, %13 : vector<1x384xf32>
    %c9 = arith.constant 9 : index
    %15 = memref.load %arg2[%c9] : memref<72xf32, #tpu.memory_space<smem>>
    %16 = vector.broadcast %15 : f32 to vector<1x384xf32>
    %17 = arith.mulf %16, %8 : vector<1x384xf32>
    %18 = arith.addf %14, %17 : vector<1x384xf32>
    %c18 = arith.constant 18 : index
    %19 = memref.load %arg2[%c18] : memref<72xf32, #tpu.memory_space<smem>>
    %20 = vector.broadcast %19 : f32 to vector<1x384xf32>
    %21 = arith.mulf %20, %7 : vector<1x384xf32>
    %22 = arith.addf %3, %21 : vector<1x384xf32>
    %c27 = arith.constant 27 : index
    %23 = memref.load %arg2[%c27] : memref<72xf32, #tpu.memory_space<smem>>
    %24 = vector.broadcast %23 : f32 to vector<1x384xf32>
    %25 = arith.mulf %24, %8 : vector<1x384xf32>
    %26 = arith.addf %22, %25 : vector<1x384xf32>
    %c36 = arith.constant 36 : index
    %27 = memref.load %arg2[%c36] : memref<72xf32, #tpu.memory_space<smem>>
    %28 = vector.broadcast %27 : f32 to vector<1x384xf32>
    %29 = arith.mulf %28, %9 : vector<1x384xf32>
    %30 = arith.addf %4, %29 : vector<1x384xf32>
    %c45 = arith.constant 45 : index
    %31 = memref.load %arg2[%c45] : memref<72xf32, #tpu.memory_space<smem>>
    %32 = vector.broadcast %31 : f32 to vector<1x384xf32>
    %33 = arith.mulf %32, %10 : vector<1x384xf32>
    %34 = arith.addf %30, %33 : vector<1x384xf32>
    %c54 = arith.constant 54 : index
    %35 = memref.load %arg2[%c54] : memref<72xf32, #tpu.memory_space<smem>>
    %36 = vector.broadcast %35 : f32 to vector<1x384xf32>
    %37 = arith.mulf %36, %9 : vector<1x384xf32>
    %38 = arith.addf %5, %37 : vector<1x384xf32>
    %c63 = arith.constant 63 : index
    %39 = memref.load %arg2[%c63] : memref<72xf32, #tpu.memory_space<smem>>
    %40 = vector.broadcast %39 : f32 to vector<1x384xf32>
    %41 = arith.mulf %40, %10 : vector<1x384xf32>
    %42 = arith.addf %38, %41 : vector<1x384xf32>
    %c17_i32 = arith.constant 17 : i32
    %43 = tpu.dynamic_rotate %1 by %c17_i32 dim 1 : vector<4x384xf32>, i32 -> vector<4x384xf32>
    %44 = vector.extract_strided_slice %43 {offsets = [0, 0], sizes = [1, 384], strides = [1, 1]} : vector<4x384xf32> to vector<1x384xf32>
    %45 = vector.extract_strided_slice %43 {offsets = [1, 0], sizes = [1, 384], strides = [1, 1]} : vector<4x384xf32> to vector<1x384xf32>
    %46 = vector.extract_strided_slice %43 {offsets = [2, 0], sizes = [1, 384], strides = [1, 1]} : vector<4x384xf32> to vector<1x384xf32>
    %47 = vector.extract_strided_slice %43 {offsets = [3, 0], sizes = [1, 384], strides = [1, 1]} : vector<4x384xf32> to vector<1x384xf32>
    %c1 = arith.constant 1 : index
    %48 = memref.load %arg2[%c1] : memref<72xf32, #tpu.memory_space<smem>>
    %49 = vector.broadcast %48 : f32 to vector<1x384xf32>
    %50 = arith.mulf %49, %44 : vector<1x384xf32>
    %51 = arith.addf %18, %50 : vector<1x384xf32>
    %c10 = arith.constant 10 : index
    %52 = memref.load %arg2[%c10] : memref<72xf32, #tpu.memory_space<smem>>
    %53 = vector.broadcast %52 : f32 to vector<1x384xf32>
    %54 = arith.mulf %53, %45 : vector<1x384xf32>
    %55 = arith.addf %51, %54 : vector<1x384xf32>
    %c19 = arith.constant 19 : index
    %56 = memref.load %arg2[%c19] : memref<72xf32, #tpu.memory_space<smem>>
    %57 = vector.broadcast %56 : f32 to vector<1x384xf32>
    %58 = arith.mulf %57, %44 : vector<1x384xf32>
    %59 = arith.addf %26, %58 : vector<1x384xf32>
    %c28 = arith.constant 28 : index
    %60 = memref.load %arg2[%c28] : memref<72xf32, #tpu.memory_space<smem>>
    %61 = vector.broadcast %60 : f32 to vector<1x384xf32>
    %62 = arith.mulf %61, %45 : vector<1x384xf32>
    %63 = arith.addf %59, %62 : vector<1x384xf32>
    %c37 = arith.constant 37 : index
    %64 = memref.load %arg2[%c37] : memref<72xf32, #tpu.memory_space<smem>>
    %65 = vector.broadcast %64 : f32 to vector<1x384xf32>
    %66 = arith.mulf %65, %46 : vector<1x384xf32>
    %67 = arith.addf %34, %66 : vector<1x384xf32>
    %c46 = arith.constant 46 : index
    %68 = memref.load %arg2[%c46] : memref<72xf32, #tpu.memory_space<smem>>
    %69 = vector.broadcast %68 : f32 to vector<1x384xf32>
    %70 = arith.mulf %69, %47 : vector<1x384xf32>
    %71 = arith.addf %67, %70 : vector<1x384xf32>
    %c55 = arith.constant 55 : index
    %72 = memref.load %arg2[%c55] : memref<72xf32, #tpu.memory_space<smem>>
    %73 = vector.broadcast %72 : f32 to vector<1x384xf32>
    %74 = arith.mulf %73, %46 : vector<1x384xf32>
    %75 = arith.addf %42, %74 : vector<1x384xf32>
    %c64 = arith.constant 64 : index
    %76 = memref.load %arg2[%c64] : memref<72xf32, #tpu.memory_space<smem>>
    %77 = vector.broadcast %76 : f32 to vector<1x384xf32>
    %78 = arith.mulf %77, %47 : vector<1x384xf32>
    %79 = arith.addf %75, %78 : vector<1x384xf32>
    %c16_i32 = arith.constant 16 : i32
    %80 = tpu.dynamic_rotate %1 by %c16_i32 dim 1 : vector<4x384xf32>, i32 -> vector<4x384xf32>
    %81 = vector.extract_strided_slice %80 {offsets = [0, 0], sizes = [1, 384], strides = [1, 1]} : vector<4x384xf32> to vector<1x384xf32>
    %82 = vector.extract_strided_slice %80 {offsets = [1, 0], sizes = [1, 384], strides = [1, 1]} : vector<4x384xf32> to vector<1x384xf32>
    %83 = vector.extract_strided_slice %80 {offsets = [2, 0], sizes = [1, 384], strides = [1, 1]} : vector<4x384xf32> to vector<1x384xf32>
    %84 = vector.extract_strided_slice %80 {offsets = [3, 0], sizes = [1, 384], strides = [1, 1]} : vector<4x384xf32> to vector<1x384xf32>
    %c2 = arith.constant 2 : index
    %85 = memref.load %arg2[%c2] : memref<72xf32, #tpu.memory_space<smem>>
    %86 = vector.broadcast %85 : f32 to vector<1x384xf32>
    %87 = arith.mulf %86, %81 : vector<1x384xf32>
    %88 = arith.addf %55, %87 : vector<1x384xf32>
    %c11 = arith.constant 11 : index
    %89 = memref.load %arg2[%c11] : memref<72xf32, #tpu.memory_space<smem>>
    %90 = vector.broadcast %89 : f32 to vector<1x384xf32>
    %91 = arith.mulf %90, %82 : vector<1x384xf32>
    %92 = arith.addf %88, %91 : vector<1x384xf32>
    %c20 = arith.constant 20 : index
    %93 = memref.load %arg2[%c20] : memref<72xf32, #tpu.memory_space<smem>>
    %94 = vector.broadcast %93 : f32 to vector<1x384xf32>
    %95 = arith.mulf %94, %81 : vector<1x384xf32>
    %96 = arith.addf %63, %95 : vector<1x384xf32>
    %c29 = arith.constant 29 : index
    %97 = memref.load %arg2[%c29] : memref<72xf32, #tpu.memory_space<smem>>
    %98 = vector.broadcast %97 : f32 to vector<1x384xf32>
    %99 = arith.mulf %98, %82 : vector<1x384xf32>
    %100 = arith.addf %96, %99 : vector<1x384xf32>
    %c38 = arith.constant 38 : index
    %101 = memref.load %arg2[%c38] : memref<72xf32, #tpu.memory_space<smem>>
    %102 = vector.broadcast %101 : f32 to vector<1x384xf32>
    %103 = arith.mulf %102, %83 : vector<1x384xf32>
    %104 = arith.addf %71, %103 : vector<1x384xf32>
    %c47 = arith.constant 47 : index
    %105 = memref.load %arg2[%c47] : memref<72xf32, #tpu.memory_space<smem>>
    %106 = vector.broadcast %105 : f32 to vector<1x384xf32>
    %107 = arith.mulf %106, %84 : vector<1x384xf32>
    %108 = arith.addf %104, %107 : vector<1x384xf32>
    %c56 = arith.constant 56 : index
    %109 = memref.load %arg2[%c56] : memref<72xf32, #tpu.memory_space<smem>>
    %110 = vector.broadcast %109 : f32 to vector<1x384xf32>
    %111 = arith.mulf %110, %83 : vector<1x384xf32>
    %112 = arith.addf %79, %111 : vector<1x384xf32>
    %c65 = arith.constant 65 : index
    %113 = memref.load %arg2[%c65] : memref<72xf32, #tpu.memory_space<smem>>
    %114 = vector.broadcast %113 : f32 to vector<1x384xf32>
    %115 = arith.mulf %114, %84 : vector<1x384xf32>
    %116 = arith.addf %112, %115 : vector<1x384xf32>
    %c1_i32 = arith.constant 1 : i32
    %117 = tpu.dynamic_rotate %1 by %c1_i32 dim 1 : vector<4x384xf32>, i32 -> vector<4x384xf32>
    %118 = vector.extract_strided_slice %117 {offsets = [0, 0], sizes = [1, 384], strides = [1, 1]} : vector<4x384xf32> to vector<1x384xf32>
    %119 = vector.extract_strided_slice %117 {offsets = [1, 0], sizes = [1, 384], strides = [1, 1]} : vector<4x384xf32> to vector<1x384xf32>
    %120 = vector.extract_strided_slice %117 {offsets = [2, 0], sizes = [1, 384], strides = [1, 1]} : vector<4x384xf32> to vector<1x384xf32>
    %121 = vector.extract_strided_slice %117 {offsets = [3, 0], sizes = [1, 384], strides = [1, 1]} : vector<4x384xf32> to vector<1x384xf32>
    %c3 = arith.constant 3 : index
    %122 = memref.load %arg2[%c3] : memref<72xf32, #tpu.memory_space<smem>>
    %123 = vector.broadcast %122 : f32 to vector<1x384xf32>
    %124 = arith.mulf %123, %118 : vector<1x384xf32>
    %125 = arith.addf %92, %124 : vector<1x384xf32>
    %c12 = arith.constant 12 : index
    %126 = memref.load %arg2[%c12] : memref<72xf32, #tpu.memory_space<smem>>
    %127 = vector.broadcast %126 : f32 to vector<1x384xf32>
    %128 = arith.mulf %127, %119 : vector<1x384xf32>
    %129 = arith.addf %125, %128 : vector<1x384xf32>
    %c21 = arith.constant 21 : index
    %130 = memref.load %arg2[%c21] : memref<72xf32, #tpu.memory_space<smem>>
    %131 = vector.broadcast %130 : f32 to vector<1x384xf32>
    %132 = arith.mulf %131, %118 : vector<1x384xf32>
    %133 = arith.addf %100, %132 : vector<1x384xf32>
    %c30 = arith.constant 30 : index
    %134 = memref.load %arg2[%c30] : memref<72xf32, #tpu.memory_space<smem>>
    %135 = vector.broadcast %134 : f32 to vector<1x384xf32>
    %136 = arith.mulf %135, %119 : vector<1x384xf32>
    %137 = arith.addf %133, %136 : vector<1x384xf32>
    %c39 = arith.constant 39 : index
    %138 = memref.load %arg2[%c39] : memref<72xf32, #tpu.memory_space<smem>>
    %139 = vector.broadcast %138 : f32 to vector<1x384xf32>
    %140 = arith.mulf %139, %120 : vector<1x384xf32>
    %141 = arith.addf %108, %140 : vector<1x384xf32>
    %c48 = arith.constant 48 : index
    %142 = memref.load %arg2[%c48] : memref<72xf32, #tpu.memory_space<smem>>
    %143 = vector.broadcast %142 : f32 to vector<1x384xf32>
    %144 = arith.mulf %143, %121 : vector<1x384xf32>
    %145 = arith.addf %141, %144 : vector<1x384xf32>
    %c57 = arith.constant 57 : index
    %146 = memref.load %arg2[%c57] : memref<72xf32, #tpu.memory_space<smem>>
    %147 = vector.broadcast %146 : f32 to vector<1x384xf32>
    %148 = arith.mulf %147, %120 : vector<1x384xf32>
    %149 = arith.addf %116, %148 : vector<1x384xf32>
    %c66 = arith.constant 66 : index
    %150 = memref.load %arg2[%c66] : memref<72xf32, #tpu.memory_space<smem>>
    %151 = vector.broadcast %150 : f32 to vector<1x384xf32>
    %152 = arith.mulf %151, %121 : vector<1x384xf32>
    %153 = arith.addf %149, %152 : vector<1x384xf32>
    %154 = vector.extract_strided_slice %1 {offsets = [0, 0], sizes = [1, 384], strides = [1, 1]} : vector<4x384xf32> to vector<1x384xf32>
    %155 = vector.extract_strided_slice %1 {offsets = [1, 0], sizes = [1, 384], strides = [1, 1]} : vector<4x384xf32> to vector<1x384xf32>
    %156 = vector.extract_strided_slice %1 {offsets = [2, 0], sizes = [1, 384], strides = [1, 1]} : vector<4x384xf32> to vector<1x384xf32>
    %157 = vector.extract_strided_slice %1 {offsets = [3, 0], sizes = [1, 384], strides = [1, 1]} : vector<4x384xf32> to vector<1x384xf32>
    %c4 = arith.constant 4 : index
    %158 = memref.load %arg2[%c4] : memref<72xf32, #tpu.memory_space<smem>>
    %159 = vector.broadcast %158 : f32 to vector<1x384xf32>
    %160 = arith.mulf %159, %154 : vector<1x384xf32>
    %161 = arith.addf %129, %160 : vector<1x384xf32>
    %c13 = arith.constant 13 : index
    %162 = memref.load %arg2[%c13] : memref<72xf32, #tpu.memory_space<smem>>
    %163 = vector.broadcast %162 : f32 to vector<1x384xf32>
    %164 = arith.mulf %163, %155 : vector<1x384xf32>
    %165 = arith.addf %161, %164 : vector<1x384xf32>
    %c22 = arith.constant 22 : index
    %166 = memref.load %arg2[%c22] : memref<72xf32, #tpu.memory_space<smem>>
    %167 = vector.broadcast %166 : f32 to vector<1x384xf32>
    %168 = arith.mulf %167, %154 : vector<1x384xf32>
    %169 = arith.addf %137, %168 : vector<1x384xf32>
    %c31 = arith.constant 31 : index
    %170 = memref.load %arg2[%c31] : memref<72xf32, #tpu.memory_space<smem>>
    %171 = vector.broadcast %170 : f32 to vector<1x384xf32>
    %172 = arith.mulf %171, %155 : vector<1x384xf32>
    %173 = arith.addf %169, %172 : vector<1x384xf32>
    %c40 = arith.constant 40 : index
    %174 = memref.load %arg2[%c40] : memref<72xf32, #tpu.memory_space<smem>>
    %175 = vector.broadcast %174 : f32 to vector<1x384xf32>
    %176 = arith.mulf %175, %156 : vector<1x384xf32>
    %177 = arith.addf %145, %176 : vector<1x384xf32>
    %c49 = arith.constant 49 : index
    %178 = memref.load %arg2[%c49] : memref<72xf32, #tpu.memory_space<smem>>
    %179 = vector.broadcast %178 : f32 to vector<1x384xf32>
    %180 = arith.mulf %179, %157 : vector<1x384xf32>
    %181 = arith.addf %177, %180 : vector<1x384xf32>
    %c58 = arith.constant 58 : index
    %182 = memref.load %arg2[%c58] : memref<72xf32, #tpu.memory_space<smem>>
    %183 = vector.broadcast %182 : f32 to vector<1x384xf32>
    %184 = arith.mulf %183, %156 : vector<1x384xf32>
    %185 = arith.addf %153, %184 : vector<1x384xf32>
    %c67 = arith.constant 67 : index
    %186 = memref.load %arg2[%c67] : memref<72xf32, #tpu.memory_space<smem>>
    %187 = vector.broadcast %186 : f32 to vector<1x384xf32>
    %188 = arith.mulf %187, %157 : vector<1x384xf32>
    %189 = arith.addf %185, %188 : vector<1x384xf32>
    %c383_i32 = arith.constant 383 : i32
    %190 = tpu.dynamic_rotate %1 by %c383_i32 dim 1 : vector<4x384xf32>, i32 -> vector<4x384xf32>
    %191 = vector.extract_strided_slice %190 {offsets = [0, 0], sizes = [1, 384], strides = [1, 1]} : vector<4x384xf32> to vector<1x384xf32>
    %192 = vector.extract_strided_slice %190 {offsets = [1, 0], sizes = [1, 384], strides = [1, 1]} : vector<4x384xf32> to vector<1x384xf32>
    %193 = vector.extract_strided_slice %190 {offsets = [2, 0], sizes = [1, 384], strides = [1, 1]} : vector<4x384xf32> to vector<1x384xf32>
    %194 = vector.extract_strided_slice %190 {offsets = [3, 0], sizes = [1, 384], strides = [1, 1]} : vector<4x384xf32> to vector<1x384xf32>
    %c5 = arith.constant 5 : index
    %195 = memref.load %arg2[%c5] : memref<72xf32, #tpu.memory_space<smem>>
    %196 = vector.broadcast %195 : f32 to vector<1x384xf32>
    %197 = arith.mulf %196, %191 : vector<1x384xf32>
    %198 = arith.addf %165, %197 : vector<1x384xf32>
    %c14 = arith.constant 14 : index
    %199 = memref.load %arg2[%c14] : memref<72xf32, #tpu.memory_space<smem>>
    %200 = vector.broadcast %199 : f32 to vector<1x384xf32>
    %201 = arith.mulf %200, %192 : vector<1x384xf32>
    %202 = arith.addf %198, %201 : vector<1x384xf32>
    %c23 = arith.constant 23 : index
    %203 = memref.load %arg2[%c23] : memref<72xf32, #tpu.memory_space<smem>>
    %204 = vector.broadcast %203 : f32 to vector<1x384xf32>
    %205 = arith.mulf %204, %191 : vector<1x384xf32>
    %206 = arith.addf %173, %205 : vector<1x384xf32>
    %c32 = arith.constant 32 : index
    %207 = memref.load %arg2[%c32] : memref<72xf32, #tpu.memory_space<smem>>
    %208 = vector.broadcast %207 : f32 to vector<1x384xf32>
    %209 = arith.mulf %208, %192 : vector<1x384xf32>
    %210 = arith.addf %206, %209 : vector<1x384xf32>
    %c41 = arith.constant 41 : index
    %211 = memref.load %arg2[%c41] : memref<72xf32, #tpu.memory_space<smem>>
    %212 = vector.broadcast %211 : f32 to vector<1x384xf32>
    %213 = arith.mulf %212, %193 : vector<1x384xf32>
    %214 = arith.addf %181, %213 : vector<1x384xf32>
    %c50 = arith.constant 50 : index
    %215 = memref.load %arg2[%c50] : memref<72xf32, #tpu.memory_space<smem>>
    %216 = vector.broadcast %215 : f32 to vector<1x384xf32>
    %217 = arith.mulf %216, %194 : vector<1x384xf32>
    %218 = arith.addf %214, %217 : vector<1x384xf32>
    %c59 = arith.constant 59 : index
    %219 = memref.load %arg2[%c59] : memref<72xf32, #tpu.memory_space<smem>>
    %220 = vector.broadcast %219 : f32 to vector<1x384xf32>
    %221 = arith.mulf %220, %193 : vector<1x384xf32>
    %222 = arith.addf %189, %221 : vector<1x384xf32>
    %c68 = arith.constant 68 : index
    %223 = memref.load %arg2[%c68] : memref<72xf32, #tpu.memory_space<smem>>
    %224 = vector.broadcast %223 : f32 to vector<1x384xf32>
    %225 = arith.mulf %224, %194 : vector<1x384xf32>
    %226 = arith.addf %222, %225 : vector<1x384xf32>
    %c368_i32 = arith.constant 368 : i32
    %227 = tpu.dynamic_rotate %1 by %c368_i32 dim 1 : vector<4x384xf32>, i32 -> vector<4x384xf32>
    %228 = vector.extract_strided_slice %227 {offsets = [0, 0], sizes = [1, 384], strides = [1, 1]} : vector<4x384xf32> to vector<1x384xf32>
    %229 = vector.extract_strided_slice %227 {offsets = [1, 0], sizes = [1, 384], strides = [1, 1]} : vector<4x384xf32> to vector<1x384xf32>
    %230 = vector.extract_strided_slice %227 {offsets = [2, 0], sizes = [1, 384], strides = [1, 1]} : vector<4x384xf32> to vector<1x384xf32>
    %231 = vector.extract_strided_slice %227 {offsets = [3, 0], sizes = [1, 384], strides = [1, 1]} : vector<4x384xf32> to vector<1x384xf32>
    %c6 = arith.constant 6 : index
    %232 = memref.load %arg2[%c6] : memref<72xf32, #tpu.memory_space<smem>>
    %233 = vector.broadcast %232 : f32 to vector<1x384xf32>
    %234 = arith.mulf %233, %228 : vector<1x384xf32>
    %235 = arith.addf %202, %234 : vector<1x384xf32>
    %c15 = arith.constant 15 : index
    %236 = memref.load %arg2[%c15] : memref<72xf32, #tpu.memory_space<smem>>
    %237 = vector.broadcast %236 : f32 to vector<1x384xf32>
    %238 = arith.mulf %237, %229 : vector<1x384xf32>
    %239 = arith.addf %235, %238 : vector<1x384xf32>
    %c24 = arith.constant 24 : index
    %240 = memref.load %arg2[%c24] : memref<72xf32, #tpu.memory_space<smem>>
    %241 = vector.broadcast %240 : f32 to vector<1x384xf32>
    %242 = arith.mulf %241, %228 : vector<1x384xf32>
    %243 = arith.addf %210, %242 : vector<1x384xf32>
    %c33 = arith.constant 33 : index
    %244 = memref.load %arg2[%c33] : memref<72xf32, #tpu.memory_space<smem>>
    %245 = vector.broadcast %244 : f32 to vector<1x384xf32>
    %246 = arith.mulf %245, %229 : vector<1x384xf32>
    %247 = arith.addf %243, %246 : vector<1x384xf32>
    %c42 = arith.constant 42 : index
    %248 = memref.load %arg2[%c42] : memref<72xf32, #tpu.memory_space<smem>>
    %249 = vector.broadcast %248 : f32 to vector<1x384xf32>
    %250 = arith.mulf %249, %230 : vector<1x384xf32>
    %251 = arith.addf %218, %250 : vector<1x384xf32>
    %c51 = arith.constant 51 : index
    %252 = memref.load %arg2[%c51] : memref<72xf32, #tpu.memory_space<smem>>
    %253 = vector.broadcast %252 : f32 to vector<1x384xf32>
    %254 = arith.mulf %253, %231 : vector<1x384xf32>
    %255 = arith.addf %251, %254 : vector<1x384xf32>
    %c60 = arith.constant 60 : index
    %256 = memref.load %arg2[%c60] : memref<72xf32, #tpu.memory_space<smem>>
    %257 = vector.broadcast %256 : f32 to vector<1x384xf32>
    %258 = arith.mulf %257, %230 : vector<1x384xf32>
    %259 = arith.addf %226, %258 : vector<1x384xf32>
    %c69 = arith.constant 69 : index
    %260 = memref.load %arg2[%c69] : memref<72xf32, #tpu.memory_space<smem>>
    %261 = vector.broadcast %260 : f32 to vector<1x384xf32>
    %262 = arith.mulf %261, %231 : vector<1x384xf32>
    %263 = arith.addf %259, %262 : vector<1x384xf32>
    %c367_i32 = arith.constant 367 : i32
    %264 = tpu.dynamic_rotate %1 by %c367_i32 dim 1 : vector<4x384xf32>, i32 -> vector<4x384xf32>
    %265 = vector.extract_strided_slice %264 {offsets = [0, 0], sizes = [1, 384], strides = [1, 1]} : vector<4x384xf32> to vector<1x384xf32>
    %266 = vector.extract_strided_slice %264 {offsets = [1, 0], sizes = [1, 384], strides = [1, 1]} : vector<4x384xf32> to vector<1x384xf32>
    %267 = vector.extract_strided_slice %264 {offsets = [2, 0], sizes = [1, 384], strides = [1, 1]} : vector<4x384xf32> to vector<1x384xf32>
    %268 = vector.extract_strided_slice %264 {offsets = [3, 0], sizes = [1, 384], strides = [1, 1]} : vector<4x384xf32> to vector<1x384xf32>
    %c7 = arith.constant 7 : index
    %269 = memref.load %arg2[%c7] : memref<72xf32, #tpu.memory_space<smem>>
    %270 = vector.broadcast %269 : f32 to vector<1x384xf32>
    %271 = arith.mulf %270, %265 : vector<1x384xf32>
    %272 = arith.addf %239, %271 : vector<1x384xf32>
    %c16 = arith.constant 16 : index
    %273 = memref.load %arg2[%c16] : memref<72xf32, #tpu.memory_space<smem>>
    %274 = vector.broadcast %273 : f32 to vector<1x384xf32>
    %275 = arith.mulf %274, %266 : vector<1x384xf32>
    %276 = arith.addf %272, %275 : vector<1x384xf32>
    %c25 = arith.constant 25 : index
    %277 = memref.load %arg2[%c25] : memref<72xf32, #tpu.memory_space<smem>>
    %278 = vector.broadcast %277 : f32 to vector<1x384xf32>
    %279 = arith.mulf %278, %265 : vector<1x384xf32>
    %280 = arith.addf %247, %279 : vector<1x384xf32>
    %c34 = arith.constant 34 : index
    %281 = memref.load %arg2[%c34] : memref<72xf32, #tpu.memory_space<smem>>
    %282 = vector.broadcast %281 : f32 to vector<1x384xf32>
    %283 = arith.mulf %282, %266 : vector<1x384xf32>
    %284 = arith.addf %280, %283 : vector<1x384xf32>
    %c43 = arith.constant 43 : index
    %285 = memref.load %arg2[%c43] : memref<72xf32, #tpu.memory_space<smem>>
    %286 = vector.broadcast %285 : f32 to vector<1x384xf32>
    %287 = arith.mulf %286, %267 : vector<1x384xf32>
    %288 = arith.addf %255, %287 : vector<1x384xf32>
    %c52 = arith.constant 52 : index
    %289 = memref.load %arg2[%c52] : memref<72xf32, #tpu.memory_space<smem>>
    %290 = vector.broadcast %289 : f32 to vector<1x384xf32>
    %291 = arith.mulf %290, %268 : vector<1x384xf32>
    %292 = arith.addf %288, %291 : vector<1x384xf32>
    %c61 = arith.constant 61 : index
    %293 = memref.load %arg2[%c61] : memref<72xf32, #tpu.memory_space<smem>>
    %294 = vector.broadcast %293 : f32 to vector<1x384xf32>
    %295 = arith.mulf %294, %267 : vector<1x384xf32>
    %296 = arith.addf %263, %295 : vector<1x384xf32>
    %c70 = arith.constant 70 : index
    %297 = memref.load %arg2[%c70] : memref<72xf32, #tpu.memory_space<smem>>
    %298 = vector.broadcast %297 : f32 to vector<1x384xf32>
    %299 = arith.mulf %298, %268 : vector<1x384xf32>
    %300 = arith.addf %296, %299 : vector<1x384xf32>
    %c366_i32 = arith.constant 366 : i32
    %301 = tpu.dynamic_rotate %1 by %c366_i32 dim 1 : vector<4x384xf32>, i32 -> vector<4x384xf32>
    %302 = vector.extract_strided_slice %301 {offsets = [0, 0], sizes = [1, 384], strides = [1, 1]} : vector<4x384xf32> to vector<1x384xf32>
    %303 = vector.extract_strided_slice %301 {offsets = [1, 0], sizes = [1, 384], strides = [1, 1]} : vector<4x384xf32> to vector<1x384xf32>
    %304 = vector.extract_strided_slice %301 {offsets = [2, 0], sizes = [1, 384], strides = [1, 1]} : vector<4x384xf32> to vector<1x384xf32>
    %305 = vector.extract_strided_slice %301 {offsets = [3, 0], sizes = [1, 384], strides = [1, 1]} : vector<4x384xf32> to vector<1x384xf32>
    %c8 = arith.constant 8 : index
    %306 = memref.load %arg2[%c8] : memref<72xf32, #tpu.memory_space<smem>>
    %307 = vector.broadcast %306 : f32 to vector<1x384xf32>
    %308 = arith.mulf %307, %302 : vector<1x384xf32>
    %309 = arith.addf %276, %308 : vector<1x384xf32>
    %c17 = arith.constant 17 : index
    %310 = memref.load %arg2[%c17] : memref<72xf32, #tpu.memory_space<smem>>
    %311 = vector.broadcast %310 : f32 to vector<1x384xf32>
    %312 = arith.mulf %311, %303 : vector<1x384xf32>
    %313 = arith.addf %309, %312 : vector<1x384xf32>
    %c26 = arith.constant 26 : index
    %314 = memref.load %arg2[%c26] : memref<72xf32, #tpu.memory_space<smem>>
    %315 = vector.broadcast %314 : f32 to vector<1x384xf32>
    %316 = arith.mulf %315, %302 : vector<1x384xf32>
    %317 = arith.addf %284, %316 : vector<1x384xf32>
    %c35 = arith.constant 35 : index
    %318 = memref.load %arg2[%c35] : memref<72xf32, #tpu.memory_space<smem>>
    %319 = vector.broadcast %318 : f32 to vector<1x384xf32>
    %320 = arith.mulf %319, %303 : vector<1x384xf32>
    %321 = arith.addf %317, %320 : vector<1x384xf32>
    %c44 = arith.constant 44 : index
    %322 = memref.load %arg2[%c44] : memref<72xf32, #tpu.memory_space<smem>>
    %323 = vector.broadcast %322 : f32 to vector<1x384xf32>
    %324 = arith.mulf %323, %304 : vector<1x384xf32>
    %325 = arith.addf %292, %324 : vector<1x384xf32>
    %c53 = arith.constant 53 : index
    %326 = memref.load %arg2[%c53] : memref<72xf32, #tpu.memory_space<smem>>
    %327 = vector.broadcast %326 : f32 to vector<1x384xf32>
    %328 = arith.mulf %327, %305 : vector<1x384xf32>
    %329 = arith.addf %325, %328 : vector<1x384xf32>
    %c62 = arith.constant 62 : index
    %330 = memref.load %arg2[%c62] : memref<72xf32, #tpu.memory_space<smem>>
    %331 = vector.broadcast %330 : f32 to vector<1x384xf32>
    %332 = arith.mulf %331, %304 : vector<1x384xf32>
    %333 = arith.addf %300, %332 : vector<1x384xf32>
    %c71 = arith.constant 71 : index
    %334 = memref.load %arg2[%c71] : memref<72xf32, #tpu.memory_space<smem>>
    %335 = vector.broadcast %334 : f32 to vector<1x384xf32>
    %336 = arith.mulf %335, %305 : vector<1x384xf32>
    %337 = arith.addf %333, %336 : vector<1x384xf32>
    %c0_6 = arith.constant 0 : index
    %338 = memref.load %arg3[%c0_6] : memref<4xf32, #tpu.memory_space<smem>>
    %339 = vector.broadcast %338 : f32 to vector<1x384xf32>
    %340 = arith.addf %313, %339 : vector<1x384xf32>
    %c0_7 = arith.constant 0 : index
    %341 = memref.load %arg4[%c0_7] : memref<4xf32, #tpu.memory_space<smem>>
    %342 = vector.broadcast %341 : f32 to vector<1x384xf32>
    %343 = arith.mulf %342, %340 : vector<1x384xf32>
    %cst_8 = arith.constant 0.000000e+00 : f32
    %344 = vector.broadcast %cst_8 : f32 to vector<1x384xf32>
    %345 = arith.subf %344, %343 : vector<1x384xf32>
    %346 = math.exp %345 : vector<1x384xf32>
    %cst_9 = arith.constant 1.000000e+00 : f32
    %347 = vector.broadcast %cst_9 : f32 to vector<1x384xf32>
    %348 = arith.addf %347, %346 : vector<1x384xf32>
    %cst_10 = arith.constant 1.000000e+00 : f32
    %349 = vector.broadcast %cst_10 : f32 to vector<1x384xf32>
    %350 = arith.divf %349, %348 : vector<1x384xf32>
    %351 = arith.mulf %340, %350 : vector<1x384xf32>
    %352 = vector.extract_strided_slice %1 {offsets = [0, 0], sizes = [1, 384], strides = [1, 1]} : vector<4x384xf32> to vector<1x384xf32>
    %353 = arith.addf %351, %352 : vector<1x384xf32>
    %c1_11 = arith.constant 1 : index
    %354 = memref.load %arg3[%c1_11] : memref<4xf32, #tpu.memory_space<smem>>
    %355 = vector.broadcast %354 : f32 to vector<1x384xf32>
    %356 = arith.addf %321, %355 : vector<1x384xf32>
    %c1_12 = arith.constant 1 : index
    %357 = memref.load %arg4[%c1_12] : memref<4xf32, #tpu.memory_space<smem>>
    %358 = vector.broadcast %357 : f32 to vector<1x384xf32>
    %359 = arith.mulf %358, %356 : vector<1x384xf32>
    %cst_13 = arith.constant 0.000000e+00 : f32
    %360 = vector.broadcast %cst_13 : f32 to vector<1x384xf32>
    %361 = arith.subf %360, %359 : vector<1x384xf32>
    %362 = math.exp %361 : vector<1x384xf32>
    %cst_14 = arith.constant 1.000000e+00 : f32
    %363 = vector.broadcast %cst_14 : f32 to vector<1x384xf32>
    %364 = arith.addf %363, %362 : vector<1x384xf32>
    %cst_15 = arith.constant 1.000000e+00 : f32
    %365 = vector.broadcast %cst_15 : f32 to vector<1x384xf32>
    %366 = arith.divf %365, %364 : vector<1x384xf32>
    %367 = arith.mulf %356, %366 : vector<1x384xf32>
    %368 = vector.extract_strided_slice %1 {offsets = [1, 0], sizes = [1, 384], strides = [1, 1]} : vector<4x384xf32> to vector<1x384xf32>
    %369 = arith.addf %367, %368 : vector<1x384xf32>
    %c2_16 = arith.constant 2 : index
    %370 = memref.load %arg3[%c2_16] : memref<4xf32, #tpu.memory_space<smem>>
    %371 = vector.broadcast %370 : f32 to vector<1x384xf32>
    %372 = arith.addf %329, %371 : vector<1x384xf32>
    %c2_17 = arith.constant 2 : index
    %373 = memref.load %arg4[%c2_17] : memref<4xf32, #tpu.memory_space<smem>>
    %374 = vector.broadcast %373 : f32 to vector<1x384xf32>
    %375 = arith.mulf %374, %372 : vector<1x384xf32>
    %cst_18 = arith.constant 0.000000e+00 : f32
    %376 = vector.broadcast %cst_18 : f32 to vector<1x384xf32>
    %377 = arith.subf %376, %375 : vector<1x384xf32>
    %378 = math.exp %377 : vector<1x384xf32>
    %cst_19 = arith.constant 1.000000e+00 : f32
    %379 = vector.broadcast %cst_19 : f32 to vector<1x384xf32>
    %380 = arith.addf %379, %378 : vector<1x384xf32>
    %cst_20 = arith.constant 1.000000e+00 : f32
    %381 = vector.broadcast %cst_20 : f32 to vector<1x384xf32>
    %382 = arith.divf %381, %380 : vector<1x384xf32>
    %383 = arith.mulf %372, %382 : vector<1x384xf32>
    %384 = vector.extract_strided_slice %1 {offsets = [2, 0], sizes = [1, 384], strides = [1, 1]} : vector<4x384xf32> to vector<1x384xf32>
    %385 = arith.addf %383, %384 : vector<1x384xf32>
    %c3_21 = arith.constant 3 : index
    %386 = memref.load %arg3[%c3_21] : memref<4xf32, #tpu.memory_space<smem>>
    %387 = vector.broadcast %386 : f32 to vector<1x384xf32>
    %388 = arith.addf %337, %387 : vector<1x384xf32>
    %c3_22 = arith.constant 3 : index
    %389 = memref.load %arg4[%c3_22] : memref<4xf32, #tpu.memory_space<smem>>
    %390 = vector.broadcast %389 : f32 to vector<1x384xf32>
    %391 = arith.mulf %390, %388 : vector<1x384xf32>
    %cst_23 = arith.constant 0.000000e+00 : f32
    %392 = vector.broadcast %cst_23 : f32 to vector<1x384xf32>
    %393 = arith.subf %392, %391 : vector<1x384xf32>
    %394 = math.exp %393 : vector<1x384xf32>
    %cst_24 = arith.constant 1.000000e+00 : f32
    %395 = vector.broadcast %cst_24 : f32 to vector<1x384xf32>
    %396 = arith.addf %395, %394 : vector<1x384xf32>
    %cst_25 = arith.constant 1.000000e+00 : f32
    %397 = vector.broadcast %cst_25 : f32 to vector<1x384xf32>
    %398 = arith.divf %397, %396 : vector<1x384xf32>
    %399 = arith.mulf %388, %398 : vector<1x384xf32>
    %400 = vector.extract_strided_slice %1 {offsets = [3, 0], sizes = [1, 384], strides = [1, 1]} : vector<4x384xf32> to vector<1x384xf32>
    %401 = arith.addf %399, %400 : vector<1x384xf32>
    %402 = tpu.concatenate %353, %369, %385, %401 in 0 : vector<1x384xf32>, vector<1x384xf32>, vector<1x384xf32>, vector<1x384xf32> -> vector<4x384xf32>
    %c0_26 = arith.constant 0 : index
    %c0_27 = arith.constant 0 : index
    %c0_28 = arith.constant 0 : index
    %403 = vector.load %arg5[%c0_26, %c0_27, %c0_28] : memref<1x4x384xf32, #tpu.memory_space<vmem>>, vector<1x4x384xf32>
    %404 = vector.shape_cast %403 : vector<1x4x384xf32> to vector<4x384xf32>
    %405 = vector.shape_cast %402 : vector<4x384xf32> to vector<1x4x384xf32>
    tpu.vector_store %arg5[%c0_26, %c0_27, %c0_28], %405 {strides = array<i32>} : memref<1x4x384xf32, #tpu.memory_space<vmem>>, vector<1x4x384xf32>,
    return
  }
  func.func @transform_0(%arg0: i32) -> (i32, i32, i32) {
    %c0_i32 = arith.constant 0 : i32
    %c0_i32_0 = arith.constant 0 : i32
    %c0_i32_1 = arith.constant 0 : i32
    return %arg0, %c0_i32, %c0_i32_0 : i32, i32, i32
  }
  func.func @transform_1(%arg0: i32) -> i32 {
    %c0_i32 = arith.constant 0 : i32
    %c0_i32_0 = arith.constant 0 : i32
    return %c0_i32 : i32
  }
  func.func @transform_2(%arg0: i32) -> i32 {
    %c0_i32 = arith.constant 0 : i32
    %c0_i32_0 = arith.constant 0 : i32
    return %c0_i32 : i32
  }
  func.func @transform_3(%arg0: i32) -> i32 {
    %c0_i32 = arith.constant 0 : i32
    %c0_i32_0 = arith.constant 0 : i32
    return %c0_i32 : i32
  }
  func.func @transform_4(%arg0: i32) -> (i32, i32, i32) {
    %c0_i32 = arith.constant 0 : i32
    %c0_i32_0 = arith.constant 0 : i32
    %c0_i32_1 = arith.constant 0 : i32
    return %arg0, %c0_i32, %c0_i32_0 : i32, i32, i32
  }
}

</mosaic_0001>

<bundles_post_ra>
// kernel: slim_block.1
= control target key start
LH: loop header
LB: loop body
LE: loop exit
PB: predicated region body
PF: predicated region fallthrough
CT: control target
= control target key end

     0   :  { %s3027_s0 = inlined_call_operand.vmem [shape: f32[2,4,384], index: 0, kind: input, shape index: {}]   ;;  %s3028_s1 = inlined_call_operand.vmem [shape: f32[72], index: 1, kind: input, shape index: {}]   ;;  %s3029_s2 = inlined_call_operand.vmem [shape: f32[4], index: 2, kind: input, shape index: {}]   ;;  %s3030_s3 = inlined_call_operand.vmem [shape: f32[4], index: 3, kind: input, shape index: {}]   ;;  %s3031_s4 = inlined_call_operand.vmem [shape: f32[2,4,384], index: 4, kind: output, shape index: {}]  }
   0x1   :  { %3118 = sst [smem:[#allocation97_spill]] %s3027_s0 }
   0x2   :  { %3119 = sst [smem:[#allocation98_spill]] %s3028_s1 }
   0x3   :  { %3120 = sst [smem:[#allocation99_spill]] %s3029_s2 }
   0x4   :  { %3121 = sst [smem:[#allocation100_spill]] %s3030_s3 }
   0x5   :  { %3122 = sst [smem:[#allocation101_spill]] %s3031_s4 }
   0x6   :  { %9 = vsyncpa [#allocation3], 0 }
   0x7   :  { %10 = vsyncpa [#allocation5], 0  ;;  %s1923_s15 = smov 0  }
   0x8 LB: > { %3123 = sst [smem:[#allocation9_spill]] %s1885_s15  ;;  %s1929_s16 = sadd.s32 4294967295, %s1885_s15   ;;  %s1885_s15 = sphi %s1923_s15, %s16_s15  }
   0x9   : > { %p1637_p0 = scmp.ge.s32.totalorder %s1885_s15, 1  ;;  %p136_p1 = scmp.lt.s32.totalorder %s1885_s15, 3 }
   0xa   : > { %s3124_s2 = sld [smem:[#allocation99_spill]]  ;;  %p3032_p3 = scmp.eq.s32.totalorder %s1929_s16, 0 }
   0xb   : > { %p1936_p2 = pnand %p1637_p0, %p136_p1  ;;  %s3126_s1 = sld [smem:[#allocation98_spill]] }
   0xc   : > { %s3127_s3 = sld [smem:[#allocation100_spill]] }
   0xd   : > { %s3125_s20 = scalar_select %p1936_p2, 1, 0 }
   0xe   : > { %p1740_p4 = pneg %p1936_p2 }
  0x10   : > { %s160_s19 = sshll.u32 %s3124_s2, 4  ;;  %p1951_p5 = pnand %p3032_p3, %p1740_p4  ;;  %s161_s19 = int_to_ptr.vmem [resolvable:$true] %s160_s19 }
  0x11   : > { %s149_s23 = sshll.u32 %s3126_s1, 4  ;;  %s1826_s28 = scalar_lea.vmem %s161_s19, 16  ;;  %s150_s23 = int_to_ptr.vmem [resolvable:$true] %s149_s23 }
  0x12   : > { %s171_s26 = sshll.u32 %s3127_s3, 4  ;;  %p1827_p6 = scmp.ne.s32.totalorder %s161_s19, %s1826_s28  ;;  %s1955_s26 = int_to_ptr.vmem [resolvable:$true] %s171_s26 }
  0x13   : > { %p1828_p7 = pneg %p1951_p5  ;;  %p1834_p10 = scmp.lt.s32.totalorder %s161_s19, %s161_s19 }
  0x14   : > { %p1835_p11 = scmp.lt.s32.totalorder %s1826_s28, %s1826_s28 }
  0x15   : > { %p1829_p8 = pnand %p1828_p7, %p1827_p6 }
  0x16   : > { %p1836_p12 = por %p1835_p11, %p1834_p10 }
  0x17   : > { %p1830_p9 = pneg %p1829_p8 }
  0x19   : > { %p1837_p13 = pnand %p1836_p12, %p1830_p9 }
  0x1b   : > { %1840 = shalt.err (!%p1837_p13)
}
  0x1c   : > { %s1887_s29 = smov [#allocation4]   ;;  %s1841_s30 = scalar_lea.vmem %s150_s23, 16 }
  0x1d   : > { %1746 = dma.vmem_to_smem (!%p1951_p5), %s161_s19, 16, %s1887_s29, [#allocation5]  }
  0x1e   : > { %p1842_p0 = scmp.ne.s32.totalorder %s150_s23, %s1841_s30  ;;  %p1849_p3 = scmp.lt.s32.totalorder %s150_s23, %s150_s23 }
  0x1f   : > { %p1850_p2 = scmp.lt.s32.totalorder %s1841_s30, %s1841_s30 }
  0x20   : > { %p1844_p1 = pnand %p1842_p0, %p1828_p7 }
  0x21   : > { %p1851_p6 = por %p1850_p2, %p1849_p3 }
  0x22   : > { %p1845_p4 = pneg %p1844_p1 }
  0x24   : > { %p1852_p8 = pnand %p1851_p6, %p1845_p4 }
  0x26   : > { %1855 = shalt.err (!%p1852_p8)
}
  0x27   : > { %s1888_s5 = smov [#allocation2]   ;;  %s1856_s6 = scalar_lea.vmem %s1955_s26, 16 }
  0x28   : > { %1743 = dma.vmem_to_smem (!%p1951_p5), %s150_s23, 16, %s1888_s5, [#allocation3]  }
  0x29   : > { %p1857_p9 = scmp.ne.s32.totalorder %s1955_s26, %s1856_s6  ;;  %p1864_p12 = scmp.lt.s32.totalorder %s1955_s26, %s1955_s26 }
  0x2a   : > { %p1865_p13 = scmp.lt.s32.totalorder %s1856_s6, %s1856_s6 }
  0x2b   : > { %p1859_p10 = pnand %p1857_p9, %p1828_p7 }
  0x2c   : > { %p1866_p2 = por %p1865_p13, %p1864_p12 }
  0x2d   : > { %p1860_p11 = pneg %p1859_p10 }
  0x2f   : > { %p1867_p3 = pnand %p1866_p2, %p1860_p11 }
  0x31   : > { %1870 = shalt.err (!%p1867_p3)
}
  0x32   : > { %s1889_s7 = smov [#allocation6]   ;;  %p3129_p0 = scmp.ne.s32.totalorder %s3125_s20, 0 }
  0x33   : > { %1749 = dma.vmem_to_smem (!%p1951_p5), %s1955_s26, 16, %s1889_s7, [#allocation5]  }
  0x34   : > { %192 = sbr.rel (%p3129_p0) target bundleno = 394 (0x18a), region = 36 }
  0x39   : > { %p3130_p1 = scmp.eq.s32.totalorder %s1929_s16, 0 }
  0x3b   : > { %1876 = dma.done.wait (%p3130_p1), [#allocation3], 16   ;;  %p3131_p7 = pmov %p3130_p1 }
  0x3c   : > { %p3132_p4 = pmov %p3130_p1 }
  0x3d   : > { %1878 = vsyncadd (%p3131_p7), [#allocation3], 4294967280 }
  0x3e   : > { %1880 = dma.done.wait (%p3132_p4), [#allocation5], 32   ;;  %p3133_p6 = pmov %p3130_p1 }
  0x40   : > { %1882 = vsyncadd (%p3133_p6), [#allocation5], 4294967264 }
  0x41   : > { %206 = sfence }
  0x42   : > { %p227_p8 = scmp.lt.s32.totalorder %s1929_s16, 1  ;;  %s3135_s0 = sld [smem:[#allocation97_spill]]  ;;  %v249_v3 = vlaneseq  ;;  %vm1531_vm8 = vcmask 1040384   ;;  %vm1535_vm9 = vcmask 1041408   ;;  %vm1539_vm10 = vcmask 1042432  }
  0x43   : > { %s1890_s12 = smov 18   ;;  %s1891_s13 = smov 17  }
  0x44   : > { %s3339_s16 = smov (!%p227_p8, %s1929_s16), 1  ;;  %s1892_s14 = smov 16   ;;  %v2127_v4 = vand.u32 127, %v249_v3  ;;  %v2140_v8 = vshrl.u32 %v249_v3, 7 }
  0x45   : > { %3134 = sst [smem:[#allocation10_spill]] %s3339_s16  ;;  %s3034_s8 = smul.u32 12, %s3339_s16 }
  0x46   : > { %s1893_s17 = smov 1   ;;  %s1894_s18 = smov 127   ;;  %v2231_v35 = vsub.s32 0, %v2140_v8  ;;  %v2234_v36 = vsub.s32 2, %v2140_v8  ;;  %v2246_v40 = vsub.s32 4, %v2140_v8  ;;  %v2272_v48 = vsub.s32 6, %v2140_v8 }
  0x47   : > { %s1895_s19 = smov 112   ;;  %s2021_s20 = sld [smem:[#allocation2]]  ;;  %v2351_v61 = vsub.s32 5, %v2140_v8  ;;  %vm251_vm0 = vcmp.lt.s32.totalorder %v2127_v4, 18  ;;  %v2376_v3 = vsub.s32 7, %v2140_v8  ;;  %vm361_vm1 = vcmp.lt.s32.totalorder %v2127_v4, 17 }
  0x48   : > { %s1999_s11 = scalar_lea.vmem %s3135_s0, %s3034_s8  ;;  %s2023_s21 = sld [smem:[#allocation2 + $0x9]]  ;;  %3174 = vst [vmem:[#allocation35_spill] sm:$0xff] %v2231_v35  ;;  %3175 = vst [vmem:[#allocation36_spill] sm:$0xff] %v2234_v36  ;;  %vm471_vm2 = vcmp.lt.s32.totalorder %v2127_v4, 16  ;;  %vm581_vm3 = vcmp.lt.s32.totalorder %v2127_v4, 1  ;;  %vm883_vm4 = vcmp.lt.s32.totalorder %v2127_v4, 127 }
  0x49   : > { %3136 = sst [smem:[#allocation11_spill]] %s1999_s11  ;;  %v2002_v0 = vld [vmem:[%s1999_s11 + $0x8] sm:$0xf]  ;;  %v2005_v1 = vld [vmem:[%s1999_s11] sm:$0xff]  ;;  %s1896_s22 = smov 111   ;;  %3176 = vst [vmem:[#allocation37_spill] sm:$0xff] %v2246_v40 }
  0x4a   : > { %247 = vrot.lane.b32.xlu1 %v2002_v0, %s1890_s12  ;;  %243 = vrot.lane.b32.xlu0 %v2005_v1, %s1890_s12  ;;  %v241_v2 = vcombine.high %v2005_v1, %v2005_v1  ;;  %s2026_s23 = sld [smem:[#allocation2 + $0x12]]  ;;  %s1897_s27 = smov 110   ;;  %3182 = vst [vmem:[#allocation40_spill] sm:$0xff] %v2272_v48  ;;  %3197 = vst [vmem:[#allocation53_spill] sm:$0xff] %v2351_v61  ;;  %vm993_vm5 = vcmp.lt.s32.totalorder %v2127_v4, 112  ;;  %vm1103_vm6 = vcmp.lt.s32.totalorder %v2127_v4, 111 }
  0x4b   : > { %s2028_s24 = sld [smem:[#allocation2 + $0x1b]]  ;;  %3204 = vst [vmem:[#allocation57_spill] sm:$0xff] %v2376_v3  ;;  %vm1213_vm7 = vcmp.lt.s32.totalorder %v2127_v4, 110 }
  0x4c   : > { %s2030_s25 = sld [smem:[#allocation2 + $0x24]] }
  0x4d   : > { %s2032_s26 = sld [smem:[#allocation2 + $0x2d]]  ;;  %v2132_v5 = vstv %s2021_s20 }
  0x4e   : > { %355 = vrot.lane.b32.xlu1 %v2005_v1, %s1891_s13  ;;  %245 = vrot.lane.b32.xlu0 %v241_v2, %s1890_s12  ;;  %s2036_s28 = sld [smem:[#allocation2 + $0x36]]  ;;  %v2135_v6 = vstv %s2023_s21 }
  0x4f   : > { %s2038_s29 = sld [smem:[#allocation2 + $0x3f]] }
  0x50   : > { %s2040_s30 = sld [smem:[#allocation2 + $0x1]]  ;;  %v2138_v7 = vstv %s2026_s23 }
  0x51   : > { %s2042_s5 = sld [smem:[#allocation2 + $0xa]]  ;;  %v2145_v9 = vstv %s2028_s24 }
  0x52   : > { %359 = vrot.lane.b32.xlu1 %v2002_v0, %s1891_s13  ;;  %357 = vrot.lane.b32.xlu0 %v241_v2, %s1891_s13  ;;  %s2045_s6 = sld [smem:[#allocation2 + $0x13]]  ;;  %v2148_v10 = vstv %s2030_s25 }
  0x53   : > { %s2047_s7 = sld [smem:[#allocation2 + $0x1c]]  ;;  %v2151_v11 = vstv %s2032_s26 }
  0x54   : > { %s2049_s9 = sld [smem:[#allocation2 + $0x25]]  ;;  %v2154_v12 = vstv %s2036_s28 }
  0x55   : > { %s2051_s10 = sld [smem:[#allocation2 + $0x2e]]  ;;  %v2159_v13 = vstv %s2038_s29 }
  0x56   : > { %467 = vrot.lane.b32.xlu1 %v241_v2, %s1892_s14  ;;  %465 = vrot.lane.b32.xlu0 %v2005_v1, %s1892_s14  ;;  %s2053_s12 = sld [smem:[#allocation2 + $0x37]]  ;;  %v2162_v14 = vstv %s2040_s30 }
  0x57   : > { %s2055_s13 = sld [smem:[#allocation2 + $0x40]]  ;;  %v2165_v15 = vstv %s2042_s5 }
  0x58   : > { %s2069_s8 = sld [smem:[#allocation2 + $0x38]]  ;;  %v2168_v16 = vstv %s2045_s6 }
  0x59   : > { %s2071_s0 = sld [smem:[#allocation2 + $0x41]]  ;;  %v2173_v17 = vstv %s2047_s7 }
  0x5a   : > { %575 = vrot.lane.b32.xlu1 %v2005_v1, %s1893_s17  ;;  %469 = vrot.lane.b32.xlu0 %v2002_v0, %s1892_s14  ;;  %s2057_s14 = sld [smem:[#allocation2 + $0x2]]  ;;  %v2176_v18 = vstv %s2049_s9 }
  0x5b   : > { %s2073_s1 = sld [smem:[#allocation2 + $0x3]]  ;;  %v2179_v19 = vstv %s2051_s10 }
  0x5c   : > { %s2075_s2 = sld [smem:[#allocation2 + $0xc]]  ;;  %v2182_v20 = vstv %s2053_s12 }
  0x5d   : > { %s2077_s3 = sld [smem:[#allocation2 + $0x15]]  ;;  %v2187_v21 = vstv %s2055_s13 }
  0x5e   : > { %579 = vrot.lane.b32.xlu1 %v2002_v0, %s1893_s17  ;;  %577 = vrot.lane.b32.xlu0 %v241_v2, %s1893_s17  ;;  %s2059_s17 = sld [smem:[#allocation2 + $0xb]] }
  0x5f   : > { %3139 = sst [smem:[#allocation14_spill]] %s2069_s8 }
  0x60   : > { %3140 = sst [smem:[#allocation15_spill]] %s2071_s0  ;;  %v2190_v22 = vstv %s2057_s14 }
  0x61   : > { %3141 = sst [smem:[#allocation16_spill]] %s2073_s1 }
  0x62   : > { %879 = vrot.lane.b32.xlu1 %v241_v2, %s1894_s18  ;;  %877 = vrot.lane.b32.xlu0 %v2005_v1, %s1894_s18  ;;  %3142 = sst [smem:[#allocation17_spill]] %s2075_s2 }
  0x63   : > { %3143 = sst [smem:[#allocation18_spill]] %s2077_s3 }
  0x64   : > { %s2079_s15 = sld [smem:[#allocation2 + $0x1e]]  ;;  %v2193_v23 = vstv %s2059_s17 }
  0x65   : > { %s2081_s4 = sld [smem:[#allocation2 + $0x27]] }
  0x66   : > { %987 = vrot.lane.b32.xlu1 %v2005_v1, %s1895_s19  ;;  %881 = vrot.lane.b32.xlu0 %v2002_v0, %s1894_s18  ;;  %s2061_s18 = sld [smem:[#allocation2 + $0x14]] }
  0x67   : > { %s2083_s16 = sld [smem:[#allocation2 + $0x30]] }
  0x68   : > { %s2085_s11 = sld [smem:[#allocation2 + $0x39]] }
  0x69   : > { %s2091_s8 = sld [smem:[#allocation2 + $0x16]] }
  0x6a   : > { %991 = vrot.lane.b32.xlu1 %v2002_v0, %s1895_s19  ;;  %989 = vrot.lane.b32.xlu0 %v241_v2, %s1895_s19  ;;  %s2063_s19 = sld [smem:[#allocation2 + $0x1d]] }
  0x6b   : > { %3144 = sst [smem:[#allocation19_spill]] %s2079_s15 }
  0x6c   : > { %3145 = sst [smem:[#allocation20_spill]] %s2081_s4  ;;  %v2199_v25 = vstv %s2061_s18 }
  0x6d   : > { %3146 = sst [smem:[#allocation21_spill]] %s2083_s16 }
  0x6e   : > { %1099 = vrot.lane.b32.xlu1 %v241_v2, %s1896_s22  ;;  %1097 = vrot.lane.b32.xlu0 %v2005_v1, %s1896_s22  ;;  %3147 = sst [smem:[#allocation22_spill]] %s2085_s11 }
  0x6f   : > { %s2093_s0 = sld [smem:[#allocation2 + $0x28]]  ;;  %v734_v32 = vstv %s2091_s8 }
  0x70   : > { %s2095_s1 = sld [smem:[#allocation2 + $0x3a]]  ;;  %v2202_v26 = vstv %s2063_s19  ;;  %v2254_v42 = vmul.f32 %v734_v32, %v2005_v1  ;;  %v2282_v51 = vmul.f32 %v734_v32, %v2002_v0 }
  0x71   : > { %s2097_s2 = sld [smem:[#allocation2 + $0xd]] }
  0x72   : > { %1207 = vrot.lane.b32.xlu1 %v2005_v1, %s1897_s27  ;;  %1101 = vrot.lane.b32.xlu0 %v2002_v0, %s1896_s22  ;;  %s2065_s22 = sld [smem:[#allocation2 + $0x26]]  ;;  %3177 = vst [vmem:[#allocation38_spill] sm:$0xff] %v2254_v42  ;;  %3184 = vst [vmem:[#allocation42_spill] sm:$0xff] %v2282_v51 }
  0x73   : > { %s2099_s3 = sld [smem:[#allocation2 + $0x1f]] }
  0x74   : > { %s2101_s15 = sld [smem:[#allocation2 + $0x31]] }
  0x75   : > { %3149 = sst [smem:[#allocation24_spill]] %s2093_s0 }
  0x76   : > { %1211 = vrot.lane.b32.xlu1 %v2002_v0, %s1897_s27  ;;  %1209 = vrot.lane.b32.xlu0 %v241_v2, %s1897_s27  ;;  %s2067_s27 = sld [smem:[#allocation2 + $0x2f]]  ;;  %v2315_v2 = vsub.s32 1, %v2140_v8 }
  0x77   : > { %3150 = sst [smem:[#allocation25_spill]] %s2095_s1  ;;  %v710_v52 = vstv %s2097_s2 }
  0x78   : > { %3137 = sst [smem:[#allocation12_spill]] %s2065_s22  ;;  %v2312_v63 = vmul.f32 %v710_v52, %v2005_v1  ;;  %3189 = vst [vmem:[#allocation47_spill] sm:$0xff] %v2315_v2 }
  0x79   : > { %s2087_s22 = sld [smem:[#allocation2 + $0x42]] }
  0x7a   : > { %3151 = sst [smem:[#allocation26_spill]] %s2099_s3  ;;  %3188 = vst [vmem:[#allocation46_spill] sm:$0xff] %v2312_v63 }
  0x7b   : > { %3152 = sst [smem:[#allocation27_spill]] %s2101_s15 }
  0x7c   : > { %3138 = sst [smem:[#allocation13_spill]] %s2067_s27 }
  0x7d   : > { %s2089_s27 = sld [smem:[#allocation2 + $0x4]] }
  0x7e   : > { %s2103_s16 = sld [smem:[#allocation2 + $0x43]] }
  0x7f   : > { %3148 = sst [smem:[#allocation23_spill]] %s2087_s22 }
  0x80   : > { %s2105_s11 = sld [smem:[#allocation2 + $0x5]] }
  0x81   : > { %s2107_s22 = sld [smem:[#allocation2 + $0xe]] }
  0x82   : > { %s2109_s4 = sld [smem:[#allocation2 + $0x17]] }
  0x83   : > { %s2111_s0 = sld [smem:[#allocation2 + $0x20]]  ;;  %v686_v24 = vstv %s2089_s27 }
  0x84   : > { %3153 = sst [smem:[#allocation28_spill]] %s2103_s16  ;;  %v2228_v34 = vmul.f32 %v686_v24, %v2005_v1  ;;  %v2258_v44 = vmul.f32 %v686_v24, %v2002_v0 }
  0x85   : > { %s2113_s1 = sld [smem:[#allocation2 + $0x29]] }
  0x86   : > { %3154 = sst [smem:[#allocation29_spill]] %s2105_s11  ;;  %3172 = vst [vmem:[#allocation34_spill] sm:$0xff] %v2228_v34  ;;  %3180 = vst [vmem:[#allocation39_spill] sm:$0xff] %v2258_v44 }
  0x87   : > { %s2115_s3 = sld [smem:[#allocation2 + $0x32]] }
  0x88   : > { %3155 = sst [smem:[#allocation30_spill]] %s2109_s4 }
  0x89   : > { %3156 = sst [smem:[#allocation31_spill]] %s2111_s0 }
  0x8a   : > { %s2117_s15 = sld [smem:[#allocation2 + $0x3b]] }
  0x8b   : > { %s2119_s16 = sld [smem:[#allocation2 + $0x44]] }
  0x8c   : > { %s2121_s11 = sld [smem:[#allocation2 + $0x6]] }
  0x8d   : > { %3157 = sst [smem:[#allocation32_spill]] %s2115_s3 }
  0x8e   : > { %s2123_s4 = sld [smem:[#allocation2 + $0xf]] }
  0x8f   : > { %s2125_s0 = sld [smem:[#allocation2 + $0x18]] }
  0x90   : > { %s2129_s3 = sld [smem:[#allocation2 + $0x21]] }
  0x91   : > { %s2156_s20 = sld [smem:[#allocation2 + $0x33]] }
  0x92   : > { %s3159_s21 = sld [smem:[#allocation12_spill]] }
  0x93   : > { %s3160_s23 = sld [smem:[#allocation13_spill]] }
  0x94   : > { %3158 = sst [smem:[#allocation33_spill]] %s2123_s4 }
  0x95   : > { %s2142_s4 = sld [smem:[#allocation2 + $0x2a]] }
  0x96   : > { %s2170_s24 = sld [smem:[#allocation2 + $0x3c]]  ;;  %v2442_v61 = vstv %s2129_s3 }
  0x97   : > { %s3161_s25 = sld [smem:[#allocation14_spill]]  ;;  %3217 = vst [vmem:[#allocation69_spill] sm:$0xff] %v2442_v61  ;;  %v2448_v3 = vstv %s2156_s20 }
  0x98   : > { %s3162_s26 = sld [smem:[#allocation15_spill]]  ;;  %v2205_v27 = vstv %s3159_s21  ;;  %3219 = vst [vmem:[#allocation71_spill] sm:$0xff] %v2448_v3 }
  0x99   : > { %s3163_s28 = sld [smem:[#allocation16_spill]]  ;;  %v2208_v28 = vstv %s3160_s23 }
  0x9a   : > { %s2184_s29 = sld [smem:[#allocation2 + $0x45]] }
  0x9b   : > { %s3164_s30 = sld [smem:[#allocation17_spill]] }
  0x9c   : > { %s2196_s5 = sld [smem:[#allocation2 + $0x7]] }
  0x9d   : > { %s3165_s6 = sld [smem:[#allocation18_spill]]  ;;  %v2213_v29 = vstv %s3161_s25 }
  0x9e   : > { %s3166_s7 = sld [smem:[#allocation19_spill]]  ;;  %v2216_v30 = vstv %s3162_s26 }
  0x9f   : > { %s3167_s9 = sld [smem:[#allocation24_spill]]  ;;  %v2219_v31 = vstv %s3163_s28 }
  0xa0   : > { %s2210_s10 = sld [smem:[#allocation2 + $0x10]] }
  0xa1   : > { %s3168_s12 = sld [smem:[#allocation20_spill]]  ;;  %v2225_v33 = vstv %s3164_s30 }
  0xa2   : > { %s3169_s13 = sld [smem:[#allocation25_spill]] }
  0xa3   : > { %s2222_s14 = sld [smem:[#allocation2 + $0x19]]  ;;  %v2239_v37 = vstv %s3165_s6 }
  0xa4   : > { %s3170_s17 = sld [smem:[#allocation21_spill]]  ;;  %v2242_v38 = vstv %s3166_s7 }
  0xa5   : > { %s3171_s18 = sld [smem:[#allocation22_spill]]  ;;  %v782_v39 = vstv %s3167_s9 }
  0xa6   : > { %s3173_s19 = sld [smem:[#allocation23_spill]]  ;;  %v2279_v50 = vmul.f32 %v782_v39, %v2005_v1  ;;  %v2301_v59 = vmul.f32 %v782_v39, %v2002_v0  ;;  %v2328_v39 = vsub.s32 3, %v2140_v8  ;;  %v2445_v8 = vstv %s2142_s4 }
  0xa7   : > { %s2236_s27 = sld [smem:[#allocation2 + $0x22]]  ;;  %v2251_v41 = vstv %s3168_s12  ;;  %3218 = vst [vmem:[#allocation70_spill] sm:$0xff] %v2445_v8 }
  0xa8   : > { %s2248_s8 = sld [smem:[#allocation2 + $0x2b]]  ;;  %v830_v43 = vstv %s3169_s13  ;;  %3183 = vst [vmem:[#allocation41_spill] sm:$0xff] %v2279_v50  ;;  %3186 = vst [vmem:[#allocation44_spill] sm:$0xff] %v2301_v59  ;;  %v2417_v59 = vstv %s2117_s15 }
  0xa9   : > { %s3178_s21 = sld [smem:[#allocation26_spill]]  ;;  %v2288_v53 = vmul.f32 %v830_v43, %v2005_v1  ;;  %v2309_v62 = vmul.f32 %v830_v43, %v2002_v0  ;;  %3192 = vst [vmem:[#allocation50_spill] sm:$0xff] %v2328_v39  ;;  %v2348_v43 = vmul.f32 %v710_v52, %v2002_v0  ;;  %3212 = vst [vmem:[#allocation64_spill] sm:$0xff] %v2417_v59  ;;  %v2465_v61 = vstv %s2222_s14 }
  0xaa   : > { %s3179_s23 = sld [smem:[#allocation27_spill]]  ;;  %v2263_v45 = vstv %s3170_s17  ;;  %3224 = vst [vmem:[#allocation76_spill] sm:$0xff] %v2465_v61 }
  0xab   : > { %s2260_s25 = sld [smem:[#allocation2 + $0x34]]  ;;  %v2266_v46 = vstv %s3171_s18  ;;  %3185 = vst [vmem:[#allocation43_spill] sm:$0xff] %v2288_v53  ;;  %3187 = vst [vmem:[#allocation45_spill] sm:$0xff] %v2309_v62 }
  0xac   : > { %v2269_v47 = vstv %s3173_s19  ;;  %s3181_s26 = sld [smem:[#allocation28_spill]]  ;;  %3195 = vst [vmem:[#allocation52_spill] sm:$0xff] %v2348_v43  ;;  %v2420_v43 = vstv %s2119_s16 }
  0xad   : > { %s2274_s28 = sld [smem:[#allocation2 + $0x3d]]  ;;  %3213 = vst [vmem:[#allocation65_spill] sm:$0xff] %v2420_v43  ;;  %v2437_v43 = vstv %s2125_s0  ;;  %v2468_v8 = vstv %s2236_s27 }
  0xae   : > { %s2285_s30 = sld [smem:[#allocation2 + $0x46]]  ;;  %3216 = vst [vmem:[#allocation68_spill] sm:$0xff] %v2437_v43  ;;  %v2459_v43 = vstv %s2196_s5  ;;  %3225 = vst [vmem:[#allocation77_spill] sm:$0xff] %v2468_v8 }
  0xaf   : > { %v758_v55 = vstv %s3178_s21  ;;  %s2294_s6 = sld [smem:[#allocation2 + $0x8]]  ;;  %3222 = vst [vmem:[#allocation74_spill] sm:$0xff] %v2459_v43 }
  0xb0   : > { %v806_v56 = vstv %s3179_s23  ;;  %s2304_s2 = sld [smem:[#allocation2 + $0x11]]  ;;  %v2322_v24 = vmul.f32 %v758_v55, %v2005_v1  ;;  %v2361_v57 = vmul.f32 %v758_v55, %v2002_v0  ;;  %v2451_v55 = vstv %s2170_s24 }
  0xb1   : > { %s2317_s7 = sld [smem:[#allocation2 + $0x1a]]  ;;  %v2325_v32 = vmul.f32 %v806_v56, %v2005_v1  ;;  %v2364_v52 = vmul.f32 %v806_v56, %v2002_v0  ;;  %v2383_v56 = vstv %s2107_s22  ;;  %3220 = vst [vmem:[#allocation72_spill] sm:$0xff] %v2451_v55  ;;  %v2474_v3 = vstv %s2260_s25 }
  0xb2   : > { %v854_v60 = vstv %s3181_s26  ;;  %3190 = vst [vmem:[#allocation48_spill] sm:$0xff] %v2322_v24  ;;  %s2330_s9 = sld [smem:[#allocation2 + $0x23]]  ;;  %3199 = vst [vmem:[#allocation54_spill] sm:$0xff] %v2361_v57 }
  0xb3   : > { %3191 = vst [vmem:[#allocation49_spill] sm:$0xff] %v2325_v32  ;;  %s3193_s12 = sld [smem:[#allocation29_spill]]  ;;  %v2339_v54 = vmul.f32 %v854_v60, %v2005_v1  ;;  %3200 = vst [vmem:[#allocation55_spill] sm:$0xff] %v2364_v52  ;;  %v2389_v58 = vmul.f32 %v854_v60, %v2002_v0  ;;  %v2405_v0 = vstv %s2113_s1  ;;  %v2431_v52 = vstv %s2121_s11 }
  0xb4   : > { %s2341_s13 = sld [smem:[#allocation2 + $0x2c]]  ;;  %3205 = vst [vmem:[#allocation58_spill] sm:$0xff] %v2383_v56  ;;  %3210 = vst [vmem:[#allocation62_spill] sm:$0xff] %v2405_v0  ;;  %v2477_v55 = vstv %s2274_s28  ;;  %v2480_v48 = vstv %s2285_s30 }
  0xb5   : > { %3194 = vst [vmem:[#allocation51_spill] sm:$0xff] %v2339_v54  ;;  %s3196_s17 = sld [smem:[#allocation30_spill]]  ;;  %3207 = vst [vmem:[#allocation60_spill] sm:$0xff] %v2389_v58  ;;  %v2471_v58 = vstv %s2248_s8  ;;  %v2483_v43 = vstv %s2294_s6 }
  0xb6   : > { %s2353_s18 = sld [smem:[#allocation2 + $0x35]]  ;;  %3214 = vst [vmem:[#allocation66_spill] sm:$0xff] %v2431_v52  ;;  %v2456_v52 = vstv %s2184_s29  ;;  %3226 = vst [vmem:[#allocation78_spill] sm:$0xff] %v2471_v58 }
  0xb7   : > { %s3198_s19 = sld [smem:[#allocation31_spill]]  ;;  %3221 = vst [vmem:[#allocation73_spill] sm:$0xff] %v2456_v52  ;;  %3227 = vst [vmem:[#allocation79_spill] sm:$0xff] %v2474_v3  ;;  %v2489_v61 = vstv %s2317_s7 }
  0xb8   : > { %s2366_s21 = sld [smem:[#allocation2 + $0x3e]]  ;;  %3229 = vst [vmem:[#allocation80_spill] sm:$0xff] %v2477_v55  ;;  %3230 = vst [vmem:[#allocation81_spill] sm:$0xff] %v2480_v48  ;;  %v2496_v55 = vstv %s2330_s9 }
  0xb9   : > { %s3202_s23 = sld [smem:[#allocation32_spill]]  ;;  %v2373_v1 = vstv %s3193_s12  ;;  %3231 = vst [vmem:[#allocation82_spill] sm:$0xff] %v2483_v43  ;;  %3233 = vst [vmem:[#allocation84_spill] sm:$0xff] %v2489_v61 }
  0xba   : > { %3203 = vst [vmem:[#allocation56_spill] sm:$0xff] %v2373_v1  ;;  %s2378_s26 = sld [smem:[#allocation2 + $0x47]]  ;;  %3234 = vst [vmem:[#allocation85_spill] sm:$0xff] %v2496_v55  ;;  %v2499_v58 = vstv %s2341_s13 }
  0xbb   : > { %v2386_v62 = vstv %s3196_s17  ;;  %s3209_s12 = sld [smem:[#allocation33_spill]]  ;;  %3235 = vst [vmem:[#allocation86_spill] sm:$0xff] %v2499_v58 }
  0xbc   : > { %3206 = vst [vmem:[#allocation59_spill] sm:$0xff] %v2386_v62  ;;  %s2402_s22 = sld [smem:[#allocation6]]  ;;  %v248_v52 = vpop.permute.xlu1 %247  ;;  %v244_v59 = vpop.permute.xlu0 %243  ;;  %v2502_v48 = vstv %s2353_s18 }
  0xbd   : > { %v2394_v49 = vstv %s3198_s19  ;;  %s2414_s17 = sld [smem:[#allocation4 + $0x1]]  ;;  %v254_v3 = vsel %vm251_vm0, %v248_v52, %v244_v59  ;;  %3236 = vst [vmem:[#allocation87_spill] sm:$0xff] %v2502_v48 }
  0xbe   : > { %3201 = sst [smem:[#allocation12_spill]] %s2366_s21  ;;  %3208 = vst [vmem:[#allocation61_spill] sm:$0xff] %v2394_v49  ;;  %v265_v43 = vmul.f32 %v2135_v6, %v254_v3  ;;  %v315_v51 = vmul.f32 %v2151_v11, %v254_v3  ;;  %v340_v55 = vmul.f32 %v2159_v13, %v254_v3 }
  0xbf   : > { %s2391_s21 = sld [smem:[#allocation4]]  ;;  %v2408_v60 = vstv %s3202_s23 }
  0xc0   : > { %3211 = vst [vmem:[#allocation63_spill] sm:$0xff] %v2408_v60  ;;  %s2426_s1 = sld [smem:[#allocation6 + $0x1]]  ;;  %v2511_v8 = vstv %s2378_s26  ;;  %v271_v48 = vrot.slane %v265_v43, 1  ;;  %v2521_v44 = vpop.permute.xlu1 %355  ;;  %v246_v60 = vpop.permute.xlu0 %245  ;;  %v257_v43 = vmul.f32 %v2132_v5, %v254_v3  ;;  %v321_v1 = vrot.slane %v315_v51, 1 }
  0xc1   : > { %v2434_v57 = vstv %s3209_s12  ;;  %s2439_s15 = sld [smem:[#allocation4 + $0x2]]  ;;  %3238 = vst [vmem:[#allocation89_spill] sm:$0xff] %v2511_v8 }
  0xc2   : > { %3215 = vst [vmem:[#allocation67_spill] sm:$0xff] %v2434_v57  ;;  %s2453_s16 = sld [smem:[#allocation6 + $0x2]]  ;;  %v2462_v57 = vstv %s2210_s10  ;;  %v2519_v58 = vstv %s2402_s22 }
  0xc3   : > { %3223 = vst [vmem:[#allocation75_spill] sm:$0xff] %v2462_v57  ;;  %s3228_s0 = sld [smem:[#allocation12_spill]]  ;;  %v2486_v57 = vstv %s2304_s2  ;;  %3240 = vst [vmem:[#allocation91_spill] sm:$0xff] %v2519_v58  ;;  %v2524_v0 = vstv %s2414_s17  ;;  %v282_v58 = vmul.f32 %v2138_v7, %v254_v3 }
  0xc4   : > { %3232 = vst [vmem:[#allocation83_spill] sm:$0xff] %v2486_v57  ;;  %s2491_s3 = sld [smem:[#allocation4 + $0x3]]  ;;  %v290_v57 = vmul.f32 %v2145_v9, %v254_v3  ;;  %3241 = vst [vmem:[#allocation92_spill] sm:$0xff] %v2524_v0  ;;  %v307_v0 = vmul.f32 %v2148_v10, %v254_v3 }
  0xc5   : > { %v2516_v54 = vstv %s2391_s21  ;;  %s2665_s4 = sld [smem:[#allocation6 + $0x3]] }
  0xc6   : > { %3239 = vst [vmem:[#allocation90_spill] sm:$0xff] %v2516_v54  ;;  %v2527_v49 = vstv %s2426_s1  ;;  %v296_v8 = vrot.slane %v290_v57, 1  ;;  %v253_v54 = vsel %vm251_vm0, %v244_v59, %v246_v60  ;;  %v327_v63 = vadd.f32 %v321_v1, %v307_v0  ;;  %s3333_s11 = sld [smem:[#allocation11_spill]] }
  0xc7   : > { %3242 = vst [vmem:[#allocation93_spill] sm:$0xff] %v2527_v49  ;;  %v2530_v62 = vstv %s2439_s15  ;;  %v332_v49 = vmul.f32 %v2154_v12, %v254_v3  ;;  %v266_v57 = vmul.f32 %v2135_v6, %v253_v54  ;;  %v291_v32 = vmul.f32 %v2145_v9, %v253_v54  ;;  %s3334_s20 = sld [smem:[#allocation10_spill]] }
  0xc8   : > { %3243 = vst [vmem:[#allocation94_spill] sm:$0xff] %v2530_v62  ;;  %v2537_v56 = vstv %s2453_s16  ;;  %v346_v62 = vrot.slane %v340_v55, 1  ;;  %v258_v24 = vmul.f32 %v2132_v5, %v253_v54  ;;  %v316_v55 = vmul.f32 %v2151_v11, %v253_v54  ;;  %s3336_s10 = sld [smem:[#allocation101_spill]] }
  0xc9   : > { %v2508_v61 = vstv %s3228_s0  ;;  %3244 = vst [vmem:[#allocation95_spill] sm:$0xff] %v2537_v56  ;;  %v302_v56 = vadd.f32 %v296_v8, %v282_v58  ;;  %v272_v51 = vrot.slane %v266_v57, 1  ;;  %v297_v8 = vrot.slane %v291_v32, 1 }
  0xca   : > { %3237 = vst [vmem:[#allocation88_spill] sm:$0xff] %v2508_v61  ;;  %v252_v61 = vsel %vm251_vm0, %v246_v60, %v248_v52  ;;  %v277_v52 = vadd.f32 %v271_v48, %v257_v43  ;;  %v2548_v60 = vstv %s2491_s3  ;;  %v352_v48 = vadd.f32 %v346_v62, %v332_v49 }
  0xcb   : > { %v267_v39 = vmul.f32 %v2135_v6, %v252_v61  ;;  %v292_v59 = vmul.f32 %v2145_v9, %v252_v61  ;;  %3245 = vst [vmem:[#allocation96_spill] sm:$0xff] %v2548_v60  ;;  %v259_v2 = vmul.f32 %v2132_v5, %v252_v61  ;;  %v317_v40 = vmul.f32 %v2151_v11, %v252_v61  ;;  %v360_v6 = vpop.permute.xlu1 %359 }
  0xcc   : > { %v283_v43 = vmul.f32 %v2138_v7, %v253_v54  ;;  %v284_v9 = vmul.f32 %v2138_v7, %v252_v61  ;;  %v308_v60 = vmul.f32 %v2148_v10, %v253_v54  ;;  %v278_v58 = vadd.f32 %v272_v51, %v258_v24  ;;  %v358_v24 = vpop.permute.xlu0 %357 }
  0xcd   : > { %v273_v3 = vrot.slane %v267_v39, 1  ;;  %v298_v53 = vrot.slane %v292_v59, 1  ;;  %v309_v5 = vmul.f32 %v2148_v10, %v252_v61  ;;  %v322_v57 = vrot.slane %v316_v55, 1  ;;  %s3335_s24 = smul.u32 12, %s3334_s20 }
  0xce   : > { %v341_v39 = vmul.f32 %v2159_v13, %v253_v54  ;;  %v342_v1 = vmul.f32 %v2159_v13, %v252_v61  ;;  %v364_v11 = vsel %vm361_vm1, %v360_v6, %v2521_v44  ;;  %v323_v62 = vrot.slane %v317_v40, 1 }
  0xcf   : > { %v279_v49 = vadd.f32 %v273_v3, %v259_v2  ;;  %v367_v7 = vmul.f32 %v2162_v14, %v364_v11  ;;  %v375_v0 = vmul.f32 %v2165_v15, %v364_v11  ;;  %v333_v32 = vmul.f32 %v2154_v12, %v253_v54  ;;  %s2995_s14 = scalar_lea.vmem %s3336_s10, %s3335_s24 }
  0xd0   : > { %v334_v10 = vmul.f32 %v2154_v12, %v252_v61  ;;  %v392_v59 = vmul.f32 %v2168_v16, %v364_v11  ;;  %v400_v51 = vmul.f32 %v2173_v17, %v364_v11  ;;  %v303_v13 = vadd.f32 %v297_v8, %v283_v43 }
  0xd1   : > { %v304_v55 = vadd.f32 %v298_v53, %v284_v9  ;;  %v417_v36 = vmul.f32 %v2176_v18, %v364_v11  ;;  %v425_v2 = vmul.f32 %v2179_v19, %v364_v11  ;;  %v328_v40 = vadd.f32 %v322_v57, %v308_v60 }
  0xd2   : > { %v347_v3 = vrot.slane %v341_v39, 1  ;;  %v348_v50 = vrot.slane %v342_v1, 1  ;;  %v362_v42 = vsel %vm361_vm1, %v358_v24, %v360_v6  ;;  %v329_v35 = vadd.f32 %v323_v62, %v309_v5 }
  0xd3   : > { %v370_v54 = vadd.f32 %v367_v7, %v277_v52  ;;  %v381_v34 = vrot.slane %v375_v0, 1  ;;  %v442_v12 = vmul.f32 %v2182_v20, %v364_v11  ;;  %v395_v61 = vadd.f32 %v392_v59, %v302_v56 }
  0xd4   : > { %v406_v43 = vrot.slane %v400_v51, 1  ;;  %v450_v53 = vmul.f32 %v2187_v21, %v364_v11  ;;  %v363_v60 = vsel %vm361_vm1, %v2521_v44, %v358_v24  ;;  %v420_v9 = vadd.f32 %v417_v36, %v327_v63 }
  0xd5   : > { %v431_v8 = vrot.slane %v425_v2, 1  ;;  %v368_v57 = vmul.f32 %v2162_v14, %v363_v60  ;;  %v376_v6 = vmul.f32 %v2165_v15, %v363_v60  ;;  %v353_v52 = vadd.f32 %v347_v3, %v333_v32 }
  0xd6   : > { %v354_v5 = vadd.f32 %v348_v50, %v334_v10  ;;  %v369_v39 = vmul.f32 %v2162_v14, %v362_v42  ;;  %v377_v1 = vmul.f32 %v2165_v15, %v362_v42  ;;  %v445_v56 = vadd.f32 %v442_v12, %v352_v48  ;;  %v466_v15 = vpop.permute.xlu0 %465 }
  0xd7   : > { %v456_v62 = vrot.slane %v450_v53, 1  ;;  %v393_v11 = vmul.f32 %v2168_v16, %v363_v60  ;;  %v401_v7 = vmul.f32 %v2173_v17, %v363_v60  ;;  %v371_v0 = vadd.f32 %v368_v57, %v278_v58 }
  0xd8   : > { %v382_v44 = vrot.slane %v376_v6, 1  ;;  %v394_v36 = vmul.f32 %v2168_v16, %v362_v42  ;;  %v402_v63 = vmul.f32 %v2173_v17, %v362_v42  ;;  %v387_v24 = vadd.f32 %v381_v34, %v370_v54  ;;  %v468_v34 = vpop.permute.xlu1 %467 }
  0xd9   : > { %v2587_v59 = vadd.f32 %v406_v43, %v395_v61  ;;  %v2589_v50 = vadd.f32 %v431_v8, %v420_v9  ;;  %v418_v14 = vmul.f32 %v2176_v18, %v363_v60  ;;  %v372_v48 = vadd.f32 %v369_v39, %v279_v49 }
  0xda   : > { %v383_v32 = vrot.slane %v377_v1, 1  ;;  %v419_v10 = vmul.f32 %v2176_v18, %v362_v42  ;;  %v426_v51 = vmul.f32 %v2179_v19, %v363_v60  ;;  %v396_v58 = vadd.f32 %v393_v11, %v303_v13 }
  0xdb   : > { %v407_v2 = vrot.slane %v401_v7, 1  ;;  %v427_v16 = vmul.f32 %v2179_v19, %v362_v42  ;;  %v443_v17 = vmul.f32 %v2182_v20, %v363_v60  ;;  %v2596_v3 = vadd.f32 %v456_v62, %v445_v56  ;;  %v470_v56 = vpop.permute.xlu0 %469 }
  0xdc   : > { %v388_v54 = vadd.f32 %v382_v44, %v371_v0  ;;  %v397_v12 = vadd.f32 %v394_v36, %v304_v55  ;;  %v408_v61 = vrot.slane %v402_v63, 1  ;;  %v421_v43 = vadd.f32 %v418_v14, %v328_v40 }
  0xdd   : > { %v432_v53 = vrot.slane %v426_v51, 1  ;;  %v444_v49 = vmul.f32 %v2182_v20, %v362_v42  ;;  %v451_v18 = vmul.f32 %v2187_v21, %v363_v60  ;;  %v422_v9 = vadd.f32 %v419_v10, %v329_v35  ;;  %v2616_v10 = vpop.permute.xlu1 %575 }
  0xde   : > { %v433_v8 = vrot.slane %v427_v16, 1  ;;  %v446_v13 = vadd.f32 %v443_v17, %v353_v52  ;;  %v473_v19 = vsel %vm471_vm2, %v466_v15, %v468_v34  ;;  %v389_v57 = vadd.f32 %v383_v32, %v372_v48 }
  0xdf   : > { %v413_v6 = vadd.f32 %v407_v2, %v396_v58  ;;  %v452_v39 = vmul.f32 %v2187_v21, %v362_v42  ;;  %v457_v1 = vrot.slane %v451_v18, 1  ;;  %v414_v55 = vadd.f32 %v408_v61, %v397_v12 }
  0xe0   : > { %v478_v40 = vmul.f32 %v2190_v22, %v473_v19  ;;  %v486_v62 = vmul.f32 %v2193_v23, %v473_v19  ;;  %v503_v20 = vmul.f32 %v2199_v25, %v473_v19  ;;  %v438_v60 = vadd.f32 %v432_v53, %v421_v43 }
  0xe1   : > { %v447_v35 = vadd.f32 %v444_v49, %v354_v5  ;;  %v511_v52 = vmul.f32 %v2202_v26, %v473_v19  ;;  %v528_v11 = vmul.f32 %v2205_v27, %v473_v19  ;;  %v439_v7 = vadd.f32 %v433_v8, %v422_v9 }
  0xe2   : > { %v463_v0 = vadd.f32 %v457_v1, %v446_v13  ;;  %v536_v44 = vmul.f32 %v2208_v28, %v473_v19  ;;  %v472_v21 = vsel %vm471_vm2, %v468_v34, %v470_v56  ;;  %v458_v42 = vrot.slane %v452_v39, 1 }
  0xe3   : > { %v553_v36 = vmul.f32 %v2213_v29, %v473_v19  ;;  %v561_v63 = vmul.f32 %v2216_v30, %v473_v19  ;;  %v474_v5 = vsel %vm471_vm2, %v470_v56, %v466_v15  ;;  %v481_v14 = vadd.f32 %v478_v40, %v388_v54  ;;  %v580_v40 = vpop.permute.xlu1 %579 }
  0xe4   : > { %v492_v48 = vrot.slane %v486_v62, 1  ;;  %v506_v32 = vadd.f32 %v503_v20, %v413_v6  ;;  %v477_v51 = vmul.f32 %v2190_v22, %v474_v5  ;;  %v517_v58 = vrot.slane %v511_v52, 1 }
  0xe5   : > { %v531_v2 = vadd.f32 %v528_v11, %v438_v60  ;;  %v479_v16 = vmul.f32 %v2190_v22, %v472_v21  ;;  %v485_v17 = vmul.f32 %v2193_v23, %v474_v5  ;;  %v542_v34 = vrot.slane %v536_v44, 1 }
  0xe6   : > { %v556_v12 = vadd.f32 %v553_v36, %v463_v0  ;;  %v487_v61 = vmul.f32 %v2193_v23, %v472_v21  ;;  %v502_v43 = vmul.f32 %v2199_v25, %v474_v5  ;;  %v567_v15 = vrot.slane %v561_v63, 1 }
  0xe7   : > { %v480_v54 = vadd.f32 %v477_v51, %v387_v24  ;;  %v491_v53 = vrot.slane %v485_v17, 1  ;;  %v510_v49 = vmul.f32 %v2202_v26, %v474_v5  ;;  %v464_v18 = vadd.f32 %v458_v42, %v447_v35 }
  0xe8   : > { %v498_v9 = vadd.f32 %v492_v48, %v481_v14  ;;  %v504_v8 = vmul.f32 %v2199_v25, %v472_v21  ;;  %v527_v13 = vmul.f32 %v2205_v27, %v474_v5  ;;  %v2626_v22 = vadd.f32 %v517_v58, %v506_v32  ;;  %v578_v58 = vpop.permute.xlu0 %577 }
  0xe9   : > { %v482_v19 = vadd.f32 %v479_v16, %v389_v57  ;;  %v493_v6 = vrot.slane %v487_v61, 1  ;;  %v512_v39 = vmul.f32 %v2202_v26, %v472_v21  ;;  %v505_v23 = vadd.f32 %v502_v43, %v2587_v59 }
  0xea   : > { %v516_v1 = vrot.slane %v510_v49, 1  ;;  %v529_v24 = vmul.f32 %v2205_v27, %v472_v21  ;;  %v535_v56 = vmul.f32 %v2208_v28, %v474_v5  ;;  %v2632_v62 = vadd.f32 %v542_v34, %v531_v2 }
  0xeb   : > { %v2634_v20 = vadd.f32 %v567_v15, %v556_v12  ;;  %v497_v25 = vadd.f32 %v491_v53, %v480_v54  ;;  %v552_v60 = vmul.f32 %v2213_v29, %v474_v5  ;;  %v507_v35 = vadd.f32 %v504_v8, %v414_v55 }
  0xec   : > { %v530_v57 = vadd.f32 %v527_v13, %v2589_v50  ;;  %v541_v52 = vrot.slane %v535_v56, 1  ;;  %v560_v26 = vmul.f32 %v2216_v30, %v474_v5  ;;  %v499_v59 = vadd.f32 %v493_v6, %v482_v19 }
  0xed   : > { %v518_v11 = vrot.slane %v512_v39, 1  ;;  %v555_v27 = vadd.f32 %v552_v60, %v2596_v3  ;;  %v584_v0 = vsel %vm581_vm3, %v580_v40, %v2616_v10  ;;  %v522_v44 = vadd.f32 %v516_v1, %v505_v23 }
  0xee   : > { %v532_v42 = vadd.f32 %v529_v24, %v439_v7  ;;  %v566_v36 = vrot.slane %v560_v26, 1  ;;  %v587_v63 = vmul.f32 %v2219_v31, %v584_v0  ;;  %v537_v55 = vmul.f32 %v2208_v28, %v472_v21  ;;  %v3246_v26 = vld [vmem:[#allocation34_spill] sm:$0xff] }
  0xef   : > { %v554_v50 = vmul.f32 %v2213_v29, %v472_v21  ;;  %v595_v14 = vmul.f32 %v2225_v33, %v584_v0  ;;  %v612_v5 = vmul.f32 %v2239_v37, %v584_v0  ;;  %v547_v48 = vadd.f32 %v541_v52, %v530_v57 }
  0xf0   : > { %v562_v3 = vmul.f32 %v2216_v30, %v472_v21  ;;  %v620_v32 = vmul.f32 %v2242_v38, %v584_v0  ;;  %v637_v51 = vmul.f32 %v2251_v41, %v584_v0  ;;  %v572_v7 = vadd.f32 %v566_v36, %v555_v27 }
  0xf1   : > { %v590_v2 = vadd.f32 %v587_v63, %v497_v25  ;;  %v601_v16 = vrot.slane %v595_v14, 1  ;;  %v645_v17 = vmul.f32 %v2263_v45, %v584_v0  ;;  %v615_v28 = vadd.f32 %v612_v5, %v522_v44 }
  0xf2   : > { %v626_v34 = vrot.slane %v620_v32, 1  ;;  %v662_v29 = vmul.f32 %v2266_v46, %v584_v0  ;;  %v670_v12 = vmul.f32 %v2269_v47, %v584_v0  ;;  %v543_v61 = vrot.slane %v537_v55, 1  ;;  %v3249_v0 = vld [vmem:[#allocation38_spill] sm:$0xff] }
  0xf3   : > { %v557_v43 = vadd.f32 %v554_v50, %v464_v18  ;;  %v582_v30 = vsel %vm581_vm3, %v578_v58, %v580_v40  ;;  %v583_v21 = vsel %vm581_vm3, %v2616_v10, %v578_v58  ;;  %v568_v15 = vrot.slane %v562_v3, 1 }
  0xf4   : > { %v640_v54 = vadd.f32 %v637_v51, %v547_v48  ;;  %v651_v53 = vrot.slane %v645_v17, 1  ;;  %v588_v49 = vmul.f32 %v2219_v31, %v583_v21  ;;  %v607_v8 = vadd.f32 %v601_v16, %v590_v2  ;;  %v3252_v2 = vld [vmem:[#allocation36_spill] sm:$0xff] }
  0xf5   : > { %v665_v13 = vadd.f32 %v662_v29, %v572_v7  ;;  %v676_v19 = vrot.slane %v670_v12, 1  ;;  %v596_v6 = vmul.f32 %v2225_v33, %v583_v21  ;;  %v524_v39 = vadd.f32 %v518_v11, %v507_v35  ;;  %v3251_v7 = vld [vmem:[#allocation41_spill] sm:$0xff] }
  0xf6   : > { %v632_v23 = vadd.f32 %v626_v34, %v615_v28  ;;  %v589_v18 = vmul.f32 %v2219_v31, %v582_v30  ;;  %v597_v1 = vmul.f32 %v2225_v33, %v582_v30  ;;  %v549_v24 = vadd.f32 %v543_v61, %v532_v42  ;;  %v3247_v31 = vld [vmem:[#allocation35_spill] sm:$0xff]  ;;  %v880_v61 = vpop.permute.xlu1 %879 }
  0xf7   : > { %v591_v56 = vadd.f32 %v588_v49, %v498_v9  ;;  %v602_v40 = vrot.slane %v596_v6, 1  ;;  %v613_v10 = vmul.f32 %v2239_v37, %v583_v21  ;;  %v574_v25 = vadd.f32 %v568_v15, %v557_v43  ;;  %v3259_v6 = vld [vmem:[#allocation47_spill] sm:$0xff] }
  0xf8   : > { %v657_v60 = vadd.f32 %v651_v53, %v640_v54  ;;  %v614_v57 = vmul.f32 %v2239_v37, %v582_v30  ;;  %v621_v35 = vmul.f32 %v2242_v38, %v583_v21  ;;  %v682_v52 = vadd.f32 %v676_v19, %v665_v13  ;;  %v3256_v19 = vld [vmem:[#allocation37_spill] sm:$0xff] }
  0xf9   : > { %v3248_v11 = vrot.slane %v3246_v26, %v3247_v31  ;;  %v622_v9 = vmul.f32 %v2242_v38, %v582_v30  ;;  %v638_v27 = vmul.f32 %v2251_v41, %v583_v21  ;;  %v3250_v44 = vrot.slane %v3249_v0, %v3247_v31 }
  0xfa   : > { %v592_v36 = vadd.f32 %v589_v18, %v499_v59  ;;  %v603_v63 = vrot.slane %v597_v1, 1  ;;  %v639_v55 = vmul.f32 %v2251_v41, %v582_v30  ;;  %v608_v37 = vadd.f32 %v602_v40, %v591_v56  ;;  %v3261_v1 = vld [vmem:[#allocation48_spill] sm:$0xff]  ;;  %v3263_v40 = vld [vmem:[#allocation49_spill] sm:$0xff] }
  0xfb   : > { %v706_v33 = vadd.f32 %v3248_v11, %v607_v8  ;;  %v754_v42 = vadd.f32 %v3250_v44, %v632_v23  ;;  %v616_v50 = vadd.f32 %v613_v10, %v2626_v22  ;;  %v646_v14 = vmul.f32 %v2263_v45, %v583_v21  ;;  %v3264_v10 = vld [vmem:[#allocation50_spill] sm:$0xff]  ;;  %v3268_v44 = vld [vmem:[#allocation59_spill] sm:$0xff] }
  0xfc   : > { %v647_v5 = vmul.f32 %v2263_v45, %v582_v30  ;;  %v617_v48 = vadd.f32 %v614_v57, %v524_v39  ;;  %v627_v3 = vrot.slane %v621_v35, 1  ;;  %v663_v38 = vmul.f32 %v2266_v46, %v583_v21 }
  0xfd   : > { %v664_v32 = vmul.f32 %v2266_v46, %v582_v30  ;;  %v628_v51 = vrot.slane %v622_v9, 1  ;;  %v641_v59 = vadd.f32 %v638_v27, %v2632_v62  ;;  %v652_v58 = vrot.slane %v646_v14, 1  ;;  %v878_v46 = vpop.permute.xlu0 %877  ;;  %v3254_v62 = vld [vmem:[#allocation43_spill] sm:$0xff]  ;;  %v3267_v9 = vld [vmem:[#allocation58_spill] sm:$0xff] }
  0xfe   : > { %v671_v41 = vmul.f32 %v2269_v47, %v583_v21  ;;  %v3253_v22 = vrot.slane %v3251_v7, %v3252_v2  ;;  %v642_v17 = vadd.f32 %v639_v55, %v549_v24  ;;  %v653_v28 = vrot.slane %v647_v5, 1  ;;  %v3270_v55 = vld [vmem:[#allocation62_spill] sm:$0xff]  ;;  %v3272_v14 = vld [vmem:[#allocation39_spill] sm:$0xff] }
  0xff   : > { %v672_v45 = vmul.f32 %v2269_v47, %v582_v30  ;;  %v666_v34 = vadd.f32 %v663_v38, %v2634_v20  ;;  %v667_v29 = vadd.f32 %v664_v32, %v574_v25  ;;  %v2691_v43 = vstv %s2665_s4  ;;  %v3258_v20 = vld [vmem:[#allocation46_spill] sm:$0xff]  ;;  %v3275_v32 = vld [vmem:[#allocation51_spill] sm:$0xff] }
 0x100   : > { %v802_v16 = vadd.f32 %v3253_v22, %v657_v60  ;;  %v677_v12 = vrot.slane %v671_v41, 1  ;;  %v3255_v15 = vrot.slane %v3254_v62, %v3252_v2  ;;  %v609_v54 = vadd.f32 %v603_v63, %v592_v36  ;;  %v3269_v36 = vld [vmem:[#allocation61_spill] sm:$0xff]  ;;  %v3277_v41 = vld [vmem:[#allocation42_spill] sm:$0xff] }
 0x101   : > { %v633_v53 = vadd.f32 %v627_v3, %v616_v50  ;;  %v678_v49 = vrot.slane %v672_v45, 1  ;;  %v634_v8 = vadd.f32 %v628_v51, %v617_v48  ;;  %v658_v13 = vadd.f32 %v652_v58, %v641_v59 }
 0x102   : > { %v850_v21 = vadd.f32 %v3255_v15, %v682_v52  ;;  %v3257_v47 = vrot.slane %v3246_v26, %v3256_v19  ;;  %v3260_v39 = vrot.slane %v3258_v20, %v3259_v6  ;;  %v659_v18 = vadd.f32 %v653_v28, %v642_v17  ;;  %v3266_v26 = vld [vmem:[#allocation56_spill] sm:$0xff] }
 0x103   : > { %v3262_v24 = vrot.slane %v3261_v1, %v3259_v6  ;;  %v3265_v25 = vrot.slane %v3263_v40, %v3264_v10  ;;  %v885_v57 = vsel %vm883_vm4, %v878_v46, %v880_v61  ;;  %v683_v35 = vadd.f32 %v677_v12, %v666_v34  ;;  %v3279_v17 = vld [vmem:[#allocation40_spill] sm:$0xff] }
 0x104   : > { %v707_v30 = vadd.f32 %v3257_v47, %v608_v37  ;;  %v730_v23 = vadd.f32 %v3260_v39, %v706_v33  ;;  %v684_v52 = vadd.f32 %v678_v49, %v667_v29  ;;  %v889_v11 = vmul.f32 %v3266_v26, %v885_v57  ;;  %v3281_v12 = vld [vmem:[#allocation44_spill] sm:$0xff]  ;;  %v3284_v47 = vld [vmem:[#allocation65_spill] sm:$0xff]  ;;  %v882_v39 = vpop.permute.xlu0 %881 }
 0x105   : > { %v778_v56 = vadd.f32 %v3262_v24, %v754_v42  ;;  %v826_v60 = vadd.f32 %v3265_v25, %v802_v16  ;;  %v897_v27 = vmul.f32 %v3267_v9, %v885_v57  ;;  %v914_v33 = vmul.f32 %v3268_v44, %v885_v57  ;;  %v3271_v42 = vld [vmem:[#allocation63_spill] sm:$0xff]  ;;  %v3286_v24 = vld [vmem:[#allocation45_spill] sm:$0xff] }
 0x106   : > { %v922_v63 = vmul.f32 %v3269_v36, %v885_v57  ;;  %v939_v37 = vmul.f32 %v3270_v55, %v885_v57  ;;  %v947_v50 = vmul.f32 %v3271_v42, %v885_v57  ;;  %v3273_v5 = vrot.slane %v3272_v14, %v3247_v31 }
 0x107   : > { %v3274_v3 = vrot.slane %v3249_v0, %v3256_v19  ;;  %v3276_v51 = vrot.slane %v3275_v32, %v3264_v10  ;;  %v892_v58 = vadd.f32 %v889_v11, %v730_v23  ;;  %v3278_v22 = vrot.slane %v3277_v41, %v3247_v31  ;;  %v3288_v11 = vld [vmem:[#allocation53_spill] sm:$0xff] }
 0x108   : > { %v708_v48 = vadd.f32 %v3273_v5, %v609_v54  ;;  %v3280_v28 = vrot.slane %v3251_v7, %v3279_v17  ;;  %v917_v34 = vadd.f32 %v914_v33, %v778_v56  ;;  %v942_v29 = vadd.f32 %v939_v37, %v826_v60  ;;  %v3290_v33 = vld [vmem:[#allocation52_spill] sm:$0xff] }
 0x109   : > { %v755_v38 = vadd.f32 %v3274_v3, %v633_v53  ;;  %v874_v59 = vadd.f32 %v3276_v51, %v850_v21  ;;  %v756_v16 = vadd.f32 %v3278_v22, %v634_v8  ;;  %v3282_v15 = vrot.slane %v3281_v12, %v3252_v2  ;;  %v3283_v53 = vld [vmem:[#allocation64_spill] sm:$0xff]  ;;  %v3295_v22 = vld [vmem:[#allocation57_spill] sm:$0xff] }
 0x10a   : > { %v803_v45 = vadd.f32 %v3280_v28, %v658_v13  ;;  %v903_v54 = vrot.slane %v897_v27, 1  ;;  %v964_v49 = vmul.f32 %v3283_v53, %v885_v57  ;;  %v2736_v21 = vmul.f32 %v3284_v47, %v885_v57 }
 0x10b   : > { %v804_v0 = vadd.f32 %v3282_v15, %v659_v18  ;;  %v3285_v8 = vrot.slane %v3254_v62, %v3279_v17  ;;  %v3287_v7 = vrot.slane %v3286_v24, %v3252_v2  ;;  %v928_v56 = vrot.slane %v922_v63, 1  ;;  %v3297_v15 = vld [vmem:[#allocation55_spill] sm:$0xff] }
 0x10c   : > { %v953_v25 = vrot.slane %v947_v50, 1  ;;  %v2745_v18 = vadd.f32 %v903_v54, %v892_v58  ;;  %v967_v60 = vadd.f32 %v964_v49, %v874_v59  ;;  %v3289_v57 = vrot.slane %v3258_v20, %v3288_v11  ;;  %v3292_v20 = vld [vmem:[#allocation54_spill] sm:$0xff] }
 0x10d   : > { %v851_v23 = vadd.f32 %v3285_v8, %v683_v35  ;;  %v852_v13 = vadd.f32 %v3287_v7, %v684_v52  ;;  %v3291_v37 = vrot.slane %v3290_v33, %v3259_v6  ;;  %v2753_v35 = vadd.f32 %v928_v56, %v917_v34  ;;  %v2757_v52 = vpop.permute.xlu1 %987 }
 0x10e   : > { %v731_v27 = vadd.f32 %v3289_v57, %v707_v30  ;;  %v2755_v14 = vadd.f32 %v953_v25, %v942_v29  ;;  %v884_v63 = vsel %vm883_vm4, %v880_v61, %v882_v39  ;;  %v886_v50 = vsel %vm883_vm4, %v882_v39, %v878_v46  ;;  %v3300_v39 = vld [vmem:[#allocation60_spill] sm:$0xff] }
 0x10f   : > { %v732_v62 = vadd.f32 %v3291_v37, %v708_v48  ;;  %v978_v5 = vrot.slane %v2736_v21, 1  ;;  %v3293_v30 = vrot.slane %v3292_v20, %v3259_v6  ;;  %v891_v48 = vmul.f32 %v3266_v26, %v886_v50 }
 0x110   : > { %v899_v51 = vmul.f32 %v3267_v9, %v886_v50  ;;  %v3294_v59 = vrot.slane %v3261_v1, %v3288_v11  ;;  %v890_v41 = vmul.f32 %v3266_v26, %v884_v63  ;;  %v916_v61 = vmul.f32 %v3268_v44, %v886_v50 }
 0x111   : > { %v780_v3 = vadd.f32 %v3293_v30, %v756_v16  ;;  %v924_v46 = vmul.f32 %v3269_v36, %v886_v50  ;;  %v3296_v28 = vrot.slane %v3263_v40, %v3295_v22  ;;  %v898_v16 = vmul.f32 %v3267_v9, %v884_v63  ;;  %v992_v56 = vpop.permute.xlu1 %991 }
 0x112   : > { %v779_v58 = vadd.f32 %v3294_v59, %v755_v38  ;;  %v915_v29 = vmul.f32 %v3268_v44, %v884_v63  ;;  %v923_v12 = vmul.f32 %v3269_v36, %v884_v63  ;;  %v3298_v1 = vrot.slane %v3297_v15, %v3264_v10  ;;  %v3302_v59 = vld [vmem:[#allocation66_spill] sm:$0xff] }
 0x113   : > { %v827_v34 = vadd.f32 %v3296_v28, %v803_v45  ;;  %v3299_v26 = vrot.slane %v3275_v32, %v3295_v22  ;;  %v894_v49 = vadd.f32 %v891_v48, %v732_v62  ;;  %v905_v21 = vrot.slane %v899_v51, 1 }
 0x114   : > { %v828_v38 = vadd.f32 %v3298_v1, %v804_v0  ;;  %v3301_v40 = vrot.slane %v3300_v39, %v3264_v10  ;;  %v919_v8 = vadd.f32 %v916_v61, %v780_v3  ;;  %v930_v9 = vrot.slane %v924_v46, 1 }
 0x115   : > { %v875_v54 = vadd.f32 %v3299_v26, %v851_v23  ;;  %v941_v44 = vmul.f32 %v3270_v55, %v886_v50  ;;  %v893_v24 = vadd.f32 %v890_v41, %v731_v27  ;;  %v940_v36 = vmul.f32 %v3270_v55, %v884_v63  ;;  %v3303_v41 = vld [vmem:[#allocation67_spill] sm:$0xff] }
 0x116   : > { %v876_v45 = vadd.f32 %v3301_v40, %v852_v13  ;;  %v948_v7 = vmul.f32 %v3271_v42, %v884_v63  ;;  %v949_v0 = vmul.f32 %v3271_v42, %v886_v50  ;;  %v904_v32 = vrot.slane %v898_v16, 1  ;;  %v3307_v26 = vld [vmem:[#allocation71_spill] sm:$0xff] }
 0x117   : > { %v918_v23 = vadd.f32 %v915_v29, %v779_v58  ;;  %v929_v25 = vrot.slane %v923_v12, 1  ;;  %v965_v57 = vmul.f32 %v3283_v53, %v884_v63  ;;  %v911_v33 = vadd.f32 %v905_v21, %v894_v49 }
 0x118   : > { %v966_v13 = vmul.f32 %v3283_v53, %v886_v50  ;;  %v973_v37 = vmul.f32 %v3284_v47, %v884_v63  ;;  %v974_v62 = vmul.f32 %v3284_v47, %v886_v50  ;;  %v936_v27 = vadd.f32 %v930_v9, %v919_v8  ;;  %v3304_v53 = vld [vmem:[#allocation68_spill] sm:$0xff]  ;;  %v3305_v63 = vld [vmem:[#allocation69_spill] sm:$0xff]  ;;  %v990_v47 = vpop.permute.xlu0 %989 }
 0x119   : > { %v944_v20 = vadd.f32 %v941_v44, %v828_v38  ;;  %v955_v55 = vrot.slane %v949_v0, 1  ;;  %v996_v42 = vsel %vm993_vm5, %v992_v56, %v2757_v52  ;;  %v943_v30 = vadd.f32 %v940_v36, %v827_v34  ;;  %v3306_v38 = vld [vmem:[#allocation70_spill] sm:$0xff]  ;;  %v3308_v44 = vld [vmem:[#allocation72_spill] sm:$0xff]  ;;  %v3309_v36 = vld [vmem:[#allocation73_spill] sm:$0xff] }
 0x11a   : > { %v954_v3 = vrot.slane %v948_v7, 1  ;;  %v968_v48 = vadd.f32 %v965_v57, %v875_v54  ;;  %v979_v51 = vrot.slane %v973_v37, 1  ;;  %v1001_v58 = vmul.f32 %v3302_v59, %v996_v42 }
 0x11b   : > { %v1009_v61 = vmul.f32 %v3303_v41, %v996_v42  ;;  %v1026_v46 = vmul.f32 %v3304_v53, %v996_v42  ;;  %v1034_v28 = vmul.f32 %v3305_v63, %v996_v42  ;;  %v984_v50 = vadd.f32 %v978_v5, %v967_v60 }
 0x11c   : > { %v910_v16 = vadd.f32 %v904_v32, %v893_v24  ;;  %v969_v29 = vadd.f32 %v966_v13, %v876_v45  ;;  %v980_v12 = vrot.slane %v974_v62, 1  ;;  %v935_v15 = vadd.f32 %v929_v25, %v918_v23 }
 0x11d   : > { %v961_v1 = vadd.f32 %v955_v55, %v944_v20  ;;  %v1051_v34 = vmul.f32 %v3306_v38, %v996_v42  ;;  %v2807_v54 = vmul.f32 %v3307_v26, %v996_v42  ;;  %v960_v49 = vadd.f32 %v954_v3, %v943_v30 }
 0x11e   : > { %v985_v21 = vadd.f32 %v979_v51, %v968_v48  ;;  %v1004_v39 = vadd.f32 %v1001_v58, %v911_v33  ;;  %v994_v40 = vsel %vm993_vm5, %v990_v47, %v992_v56  ;;  %v1015_v8 = vrot.slane %v1009_v61, 1  ;;  %v1098_v61 = vpop.permute.xlu0 %1097 }
 0x11f   : > { %v1029_v60 = vadd.f32 %v1026_v46, %v936_v27  ;;  %v1040_v5 = vrot.slane %v1034_v28, 1  ;;  %v995_v45 = vsel %vm993_vm5, %v2757_v52, %v990_v47  ;;  %v986_v9 = vadd.f32 %v980_v12, %v969_v29 }
 0x120   : > { %v1076_v24 = vmul.f32 %v3308_v44, %v996_v42  ;;  %v1084_v7 = vmul.f32 %v3309_v36, %v996_v42  ;;  %v999_v0 = vmul.f32 %v3302_v59, %v995_v45  ;;  %v1054_v32 = vadd.f32 %v1051_v34, %v961_v1 }
 0x121   : > { %v1065_v23 = vrot.slane %v2807_v54, 1  ;;  %v1007_v25 = vmul.f32 %v3303_v41, %v995_v45  ;;  %v1024_v56 = vmul.f32 %v3304_v53, %v995_v45  ;;  %v1000_v57 = vmul.f32 %v3302_v59, %v994_v40 }
 0x122   : > { %v1008_v33 = vmul.f32 %v3303_v41, %v994_v40  ;;  %v1025_v52 = vmul.f32 %v3304_v53, %v994_v40  ;;  %v1032_v13 = vmul.f32 %v3305_v63, %v995_v45  ;;  %v2825_v37 = vadd.f32 %v1015_v8, %v1004_v39  ;;  %v1100_v41 = vpop.permute.xlu1 %1099  ;;  %v3310_v39 = vld [vmem:[#allocation74_spill] sm:$0xff] }
 0x123   : > { %v2827_v62 = vadd.f32 %v1040_v5, %v1029_v60  ;;  %v1002_v27 = vadd.f32 %v999_v0, %v2745_v18  ;;  %v1013_v20 = vrot.slane %v1007_v25, 1  ;;  %v1079_v55 = vadd.f32 %v1076_v24, %v986_v9  ;;  %v3311_v5 = vld [vmem:[#allocation75_spill] sm:$0xff] }
 0x124   : > { %v1090_v42 = vrot.slane %v1084_v7, 1  ;;  %v1027_v30 = vadd.f32 %v1024_v56, %v2753_v35  ;;  %v1049_v3 = vmul.f32 %v3306_v38, %v995_v45  ;;  %v1033_v48 = vmul.f32 %v3305_v63, %v994_v40  ;;  %v3312_v7 = vld [vmem:[#allocation76_spill] sm:$0xff] }
 0x125   : > { %v1038_v51 = vrot.slane %v1032_v13, 1  ;;  %v1050_v59 = vmul.f32 %v3306_v38, %v994_v40  ;;  %v1057_v58 = vmul.f32 %v3307_v26, %v995_v45  ;;  %v1003_v53 = vadd.f32 %v1000_v57, %v910_v16 }
 0x126   : > { %v1014_v46 = vrot.slane %v1008_v33, 1  ;;  %v1028_v28 = vadd.f32 %v1025_v52, %v935_v15  ;;  %v1058_v18 = vmul.f32 %v3307_v26, %v994_v40  ;;  %v1019_v47 = vadd.f32 %v1013_v20, %v1002_v27  ;;  %v3314_v33 = vld [vmem:[#allocation78_spill] sm:$0xff] }
 0x127   : > { %v1052_v29 = vadd.f32 %v1049_v3, %v2755_v14  ;;  %v1074_v35 = vmul.f32 %v3308_v44, %v995_v45  ;;  %v1075_v12 = vmul.f32 %v3308_v44, %v994_v40  ;;  %v1063_v63 = vrot.slane %v1057_v58, 1 }
 0x128   : > { %v1082_v1 = vmul.f32 %v3309_v36, %v995_v45  ;;  %v1083_v38 = vmul.f32 %v3309_v36, %v994_v40  ;;  %v1105_v34 = vsel %vm1103_vm6, %v1098_v61, %v1100_v41  ;;  %v1039_v16 = vrot.slane %v1033_v48, 1  ;;  %v3313_v45 = vld [vmem:[#allocation77_spill] sm:$0xff]  ;;  %v1102_v40 = vpop.permute.xlu0 %1101 }
 0x129   : > { %v1044_v54 = vadd.f32 %v1038_v51, %v1027_v30  ;;  %v1053_v15 = vadd.f32 %v1050_v59, %v960_v49  ;;  %v1109_v26 = vmul.f32 %v3310_v39, %v1105_v34  ;;  %v1064_v8 = vrot.slane %v1058_v18, 1  ;;  %v2854_v18 = vpop.permute.xlu1 %1207 }
 0x12a   : > { %v1077_v60 = vadd.f32 %v1074_v35, %v984_v50  ;;  %v1088_v14 = vrot.slane %v1082_v1, 1  ;;  %v1117_v9 = vmul.f32 %v3311_v5, %v1105_v34  ;;  %v1078_v24 = vadd.f32 %v1075_v12, %v985_v21  ;;  %v3315_v21 = vld [vmem:[#allocation79_spill] sm:$0xff] }
 0x12b   : > { %v1089_v44 = vrot.slane %v1083_v38, 1  ;;  %v1134_v0 = vmul.f32 %v3312_v7, %v1105_v34  ;;  %v1142_v25 = vmul.f32 %v3313_v45, %v1105_v34  ;;  %v1069_v36 = vadd.f32 %v1063_v63, %v1052_v29 }
 0x12c   : > { %v1112_v56 = vadd.f32 %v1109_v26, %v1019_v47  ;;  %v1123_v57 = vrot.slane %v1117_v9, 1  ;;  %v1159_v52 = vmul.f32 %v3314_v33, %v1105_v34  ;;  %v1071_v49 = vadd.f32 %v1065_v23, %v1054_v32 }
 0x12d   : > { %v1096_v13 = vadd.f32 %v1090_v42, %v1079_v55  ;;  %v1020_v27 = vadd.f32 %v1014_v46, %v1003_v53  ;;  %v1045_v20 = vadd.f32 %v1039_v16, %v1028_v28  ;;  %v1070_v50 = vadd.f32 %v1064_v8, %v1053_v15  ;;  %v3316_v42 = vld [vmem:[#allocation80_spill] sm:$0xff]  ;;  %v3317_v28 = vld [vmem:[#allocation81_spill] sm:$0xff] }
 0x12e   : > { %v1094_v30 = vadd.f32 %v1088_v14, %v1077_v60  ;;  %v2850_v3 = vmul.f32 %v3315_v21, %v1105_v34  ;;  %v1104_v48 = vsel %vm1103_vm6, %v1100_v41, %v1102_v40  ;;  %v1095_v51 = vadd.f32 %v1089_v44, %v1078_v24  ;;  %v1212_v24 = vpop.permute.xlu1 %1211 }
 0x12f   : > { %v1137_v59 = vadd.f32 %v1134_v0, %v1044_v54  ;;  %v1148_v58 = vrot.slane %v1142_v25, 1  ;;  %v1106_v32 = vsel %vm1103_vm6, %v1102_v40, %v1098_v61  ;;  %v2858_v23 = vadd.f32 %v1123_v57, %v1112_v56 }
 0x130   : > { %v1162_v55 = vadd.f32 %v1159_v52, %v1069_v36  ;;  %v1184_v53 = vmul.f32 %v3316_v42, %v1105_v34  ;;  %v1111_v46 = vmul.f32 %v3310_v39, %v1106_v32  ;;  %v2863_v47 = vmul.f32 %v3317_v28, %v1105_v34 }
 0x131   : > { %v1110_v41 = vmul.f32 %v3310_v39, %v1104_v48  ;;  %v1119_v29 = vmul.f32 %v3311_v5, %v1106_v32  ;;  %v1136_v35 = vmul.f32 %v3312_v7, %v1106_v32  ;;  %v1173_v12 = vrot.slane %v2850_v3, 1 }
 0x132   : > { %v1118_v61 = vmul.f32 %v3311_v5, %v1104_v48  ;;  %v1135_v63 = vmul.f32 %v3312_v7, %v1104_v48  ;;  %v1143_v1 = vmul.f32 %v3313_v45, %v1104_v48  ;;  %v2872_v38 = vadd.f32 %v1148_v58, %v1137_v59  ;;  %v3319_v59 = vld [vmem:[#allocation83_spill] sm:$0xff] }
 0x133   : > { %v1114_v16 = vadd.f32 %v1111_v46, %v2825_v37  ;;  %v1125_v34 = vrot.slane %v1119_v29, 1  ;;  %v1144_v54 = vmul.f32 %v3313_v45, %v1106_v32  ;;  %v1187_v15 = vadd.f32 %v1184_v53, %v1094_v30  ;;  %v3318_v30 = vld [vmem:[#allocation82_spill] sm:$0xff]  ;;  %v3320_v53 = vld [vmem:[#allocation84_spill] sm:$0xff] }
 0x134   : > { %v1139_v39 = vadd.f32 %v1136_v35, %v2827_v62  ;;  %v1160_v26 = vmul.f32 %v3314_v33, %v1104_v48  ;;  %v1161_v8 = vmul.f32 %v3314_v33, %v1106_v32  ;;  %v1198_v60 = vrot.slane %v2863_v47, 1  ;;  %v3321_v47 = vld [vmem:[#allocation85_spill] sm:$0xff]  ;;  %v3323_v35 = vld [vmem:[#allocation87_spill] sm:$0xff] }
 0x135   : > { %v1113_v14 = vadd.f32 %v1110_v41, %v1020_v27  ;;  %v1150_v5 = vrot.slane %v1144_v54, 1  ;;  %v1169_v9 = vmul.f32 %v3315_v21, %v1106_v32  ;;  %v1124_v44 = vrot.slane %v1118_v61, 1  ;;  %v3322_v41 = vld [vmem:[#allocation86_spill] sm:$0xff] }
 0x136   : > { %v1138_v7 = vadd.f32 %v1135_v63, %v1045_v20  ;;  %v1149_v37 = vrot.slane %v1143_v1, 1  ;;  %v1164_v0 = vadd.f32 %v1161_v8, %v1071_v49  ;;  %v1131_v25 = vadd.f32 %v1125_v34, %v1114_v16 }
 0x137   : > { %v1168_v45 = vmul.f32 %v3315_v21, %v1104_v48  ;;  %v1175_v40 = vrot.slane %v1169_v9, 1  ;;  %v1186_v62 = vmul.f32 %v3316_v42, %v1106_v32  ;;  %v1156_v36 = vadd.f32 %v1150_v5, %v1139_v39  ;;  %v3325_v5 = vld [vmem:[#allocation89_spill] sm:$0xff] }
 0x138   : > { %v1163_v56 = vadd.f32 %v1160_v26, %v1070_v50  ;;  %v1194_v57 = vmul.f32 %v3317_v28, %v1106_v32  ;;  %v1216_v33 = vsel %vm1213_vm7, %v1212_v24, %v2854_v18  ;;  %v1185_v27 = vmul.f32 %v3316_v42, %v1104_v48 }
 0x139   : > { %v1181_v52 = vadd.f32 %v1175_v40, %v1164_v0  ;;  %v1189_v20 = vadd.f32 %v1186_v62, %v1096_v13  ;;  %v1221_v49 = vmul.f32 %v3318_v30, %v1216_v33  ;;  %v1193_v3 = vmul.f32 %v3317_v28, %v1104_v48  ;;  %v3324_v48 = vld [vmem:[#allocation88_spill] sm:$0xff] }
 0x13a   : > { %v1200_v21 = vrot.slane %v1194_v57, 1  ;;  %v1229_v58 = vmul.f32 %v3319_v59, %v1216_v33  ;;  %v1246_v46 = vmul.f32 %v3320_v53, %v1216_v33  ;;  %v1254_v32 = vmul.f32 %v3321_v47, %v1216_v33  ;;  %v1210_v57 = vpop.permute.xlu0 %1209 }
 0x13b   : > { %v1224_v50 = vadd.f32 %v1221_v49, %v1131_v25  ;;  %v1271_v29 = vmul.f32 %v3322_v41, %v1216_v33  ;;  %v1279_v61 = vmul.f32 %v3323_v35, %v1216_v33  ;;  %v1174_v63 = vrot.slane %v1168_v45, 1 }
 0x13c   : > { %v1206_v1 = vadd.f32 %v1200_v21, %v1189_v20  ;;  %v1235_v42 = vrot.slane %v1229_v58, 1  ;;  %v1249_v13 = vadd.f32 %v1246_v46, %v1156_v36  ;;  %v1260_v16 = vrot.slane %v1254_v32, 1  ;;  %v3326_v21 = vld [vmem:[#allocation90_spill] sm:$0xff]  ;;  %v3327_v46 = vld [vmem:[#allocation92_spill] sm:$0xff] }
 0x13d   : > { %v1274_v34 = vadd.f32 %v1271_v29, %v1181_v52  ;;  %v1285_v54 = vrot.slane %v1279_v61, 1  ;;  %v1296_v28 = vmul.f32 %v3324_v48, %v1216_v33  ;;  %v1188_v39 = vadd.f32 %v1185_v27, %v1095_v51  ;;  %v3328_v51 = vld [vmem:[#allocation94_spill] sm:$0xff]  ;;  %v3332_v29 = vld [vmem:[#allocation96_spill] sm:$0xff] }
 0x13e   : > { %v1199_v26 = vrot.slane %v1193_v3, 1  ;;  %v1241_v8 = vadd.f32 %v1235_v42, %v1224_v50  ;;  %v1304_v9 = vmul.f32 %v3325_v5, %v1216_v33  ;;  %v1179_v0 = vadd.f32 %v1173_v12, %v1162_v55  ;;  %v3329_v12 = vld [vmem:[#allocation91_spill] sm:$0xff] }
 0x13f   : > { %v1266_v25 = vadd.f32 %v1260_v16, %v1249_v13  ;;  %v1291_v40 = vadd.f32 %v1285_v54, %v1274_v34  ;;  %v1299_v62 = vadd.f32 %v1296_v28, %v1206_v1  ;;  %v1204_v49 = vadd.f32 %v1198_v60, %v1187_v15  ;;  %v3330_v60 = vld [vmem:[#allocation93_spill] sm:$0xff] }
 0x140   : > { %v1130_v45 = vadd.f32 %v1124_v44, %v1113_v14  ;;  %v1310_v20 = vrot.slane %v1304_v9, 1  ;;  %v2898_v36 = vadd.f32 %v3326_v21, %v1241_v8  ;;  %v1155_v52 = vadd.f32 %v1149_v37, %v1138_v7  ;;  %v3331_v44 = vld [vmem:[#allocation95_spill] sm:$0xff] }
 0x141   : > { %v1180_v58 = vadd.f32 %v1174_v63, %v1163_v56  ;;  %v2901_v32 = vadd.f32 %v3327_v46, %v1266_v25  ;;  %v2904_v27 = vadd.f32 %v3328_v51, %v1291_v40  ;;  %v1205_v33 = vadd.f32 %v1199_v26, %v1188_v39 }
 0x142   : > { %v1316_v55 = vadd.f32 %v1310_v20, %v1299_v62  ;;  %v1326_v3 = vmul.f32 %v3329_v12, %v2898_v36  ;;  %v1214_v15 = vsel %vm1213_vm7, %v1210_v57, %v1212_v24  ;;  %v1215_v37 = vsel %vm1213_vm7, %v2854_v18, %v1210_v57 }
 0x143   : > { %v1375_v14 = vmul.f32 %v3330_v60, %v2901_v32  ;;  %v1424_v7 = vmul.f32 %v3331_v44, %v2904_v27  ;;  %v1220_v56 = vmul.f32 %v3318_v30, %v1214_v15  ;;  %v1219_v63 = vmul.f32 %v3318_v30, %v1215_v37 }
 0x144   : > { %v1329_v50 = vsub.f32 0.0, %v1326_v3  ;;  %v2919_v61 = vadd.f32 %v3332_v29, %v1316_v55  ;;  %v1227_v24 = vmul.f32 %v3319_v59, %v1215_v37  ;;  %v1228_v16 = vmul.f32 %v3319_v59, %v1214_v15 }
 0x145   : > { %v1378_v1 = vsub.f32 0.0, %v1375_v14  ;;  %v1427_v42 = vsub.f32 0.0, %v1424_v7  ;;  %v1223_v13 = vadd.f32 %v1220_v56, %v1130_v45  ;;  %v1222_v18 = vadd.f32 %v1219_v63, %v2858_v23 }
 0x146   : > { %v1334_v34 = vmul.f32 1.442695, %v1329_v50  ;;  %v1473_v4 = vmul.f32 %v2691_v43, %v2919_v61  ;;  %v1233_v54 = vrot.slane %v1227_v24, 1  ;;  %v1234_v26 = vrot.slane %v1228_v16, 1 }
 0x147   : > { %v1383_v28 = vmul.f32 1.442695, %v1378_v1  ;;  %v1432_v39 = vmul.f32 1.442695, %v1427_v42  ;;  %v1244_v8 = vmul.f32 %v3320_v53, %v1215_v37  ;;  %v1245_v25 = vmul.f32 %v3320_v53, %v1214_v15 }
 0x148   : > { %1776 = vpow2.f32 %v1334_v34  ;;  %v1476_v30 = vsub.f32 0.0, %v1473_v4  ;;  %v1239_v9 = vadd.f32 %v1233_v54, %v1222_v18  ;;  %v1240_v40 = vadd.f32 %v1234_v26, %v1223_v13 }
 0x149   : > { %1778 = vpow2.f32 %v1383_v28  ;;  %v1247_v59 = vadd.f32 %v1244_v8, %v2872_v38  ;;  %v1252_v62 = vmul.f32 %v3321_v47, %v1215_v37  ;;  %v1248_v23 = vadd.f32 %v1245_v25, %v1155_v52 }
 0x14a   : > { %1780 = vpow2.f32 %v1432_v39  ;;  %v1481_v57 = vmul.f32 1.442695, %v1476_v30  ;;  %v1253_v45 = vmul.f32 %v3321_v47, %v1214_v15  ;;  %v1269_v55 = vmul.f32 %v3322_v41, %v1215_v37 }
 0x14b   : > { %v1258_v20 = vrot.slane %v1252_v62, 1  ;;  %v1270_v3 = vmul.f32 %v3322_v41, %v1214_v15  ;;  %v1277_v14 = vmul.f32 %v3323_v35, %v1215_v37  ;;  %v1278_v7 = vmul.f32 %v3323_v35, %v1214_v15 }
 0x14c   : > { %1782 = vpow2.f32 %v1481_v57  ;;  %v1259_v53 = vrot.slane %v1253_v45, 1  ;;  %v1294_v38 = vmul.f32 %v3324_v48, %v1215_v37  ;;  %v1272_v50 = vadd.f32 %v1269_v55, %v1179_v0 }
 0x14d   : > { %v1264_v56 = vadd.f32 %v1258_v20, %v1247_v59  ;;  %v1273_v63 = vadd.f32 %v1270_v3, %v1180_v58  ;;  %v1283_v24 = vrot.slane %v1277_v14, 1  ;;  %v1284_v1 = vrot.slane %v1278_v7, 1 }
 0x14e   : > { %v1265_v52 = vadd.f32 %v1259_v53, %v1248_v23  ;;  %v1295_v47 = vmul.f32 %v3324_v48, %v1214_v15  ;;  %v1297_v42 = vadd.f32 %v1294_v38, %v1204_v49  ;;  %v1302_v41 = vmul.f32 %v3325_v5, %v1215_v37 }
 0x14f   : > { %v1289_v13 = vadd.f32 %v1283_v24, %v1272_v50  ;;  %v1303_v16 = vmul.f32 %v3325_v5, %v1214_v15  ;;  %v2941_v34 = vadd.f32 %v3326_v21, %v1239_v9  ;;  %v1290_v35 = vadd.f32 %v1284_v1, %v1273_v63 }
 0x150   : > { %v1298_v4 = vadd.f32 %v1295_v47, %v1205_v33  ;;  %v2944_v18 = vadd.f32 %v3326_v21, %v1240_v40  ;;  %v2947_v0 = vadd.f32 %v3327_v46, %v1264_v56  ;;  %v1308_v58 = vrot.slane %v1302_v41, 1 }
 0x151   : > { %v1309_v54 = vrot.slane %v1303_v16, 1  ;;  %v1324_v48 = vmul.f32 %v3329_v12, %v2941_v34  ;;  %v2952_v49 = vadd.f32 %v3327_v46, %v1265_v52  ;;  %v2959_v21 = vadd.f32 %v3328_v51, %v1289_v13 }
 0x152   : > { %v1325_v5 = vmul.f32 %v3329_v12, %v2944_v18  ;;  %v1373_v33 = vmul.f32 %v3330_v60, %v2947_v0  ;;  %v2962_v15 = vadd.f32 %v3328_v51, %v1290_v35  ;;  %v1314_v37 = vadd.f32 %v1308_v58, %v1297_v42  ;;  %v1824_v42 = vld [vmem:[%s3333_s11 + $0x8] sm:$0xf] }
 0x153   : > { %v1315_v28 = vadd.f32 %v1309_v54, %v1298_v4  ;;  %v1327_v39 = vsub.f32 0.0, %v1324_v48  ;;  %v1374_v26 = vmul.f32 %v3330_v60, %v2952_v49  ;;  %v1422_v8 = vmul.f32 %v3331_v44, %v2959_v21 }
 0x154   : > { %v1328_v46 = vsub.f32 0.0, %v1325_v5  ;;  %v1423_v12 = vmul.f32 %v3331_v44, %v2962_v15  ;;  %v1376_v25 = vsub.f32 0.0, %v1373_v33  ;;  %v2971_v40 = vadd.f32 %v3332_v29, %v1314_v37 }
 0x155   : > { %v1777_v30 = vpop.eup %1776  ;;  %v1330_v9 = vmul.f32 1.442695, %v1327_v39  ;;  %v2974_v51 = vadd.f32 %v3332_v29, %v1315_v28  ;;  %v1377_v57 = vsub.f32 0.0, %v1374_v26  ;;  %v1425_v20 = vsub.f32 0.0, %v1422_v8 }
 0x156   : > { %v1779_v59 = vpop.eup %1778  ;;  %v1338_v62 = vadd.f32 1.0, %v1777_v30  ;;  %v1332_v45 = vmul.f32 1.442695, %v1328_v46  ;;  %v1426_v44 = vsub.f32 0.0, %v1423_v12  ;;  %v1471_v3 = vmul.f32 %v2691_v43, %v2971_v40 }
 0x157   : > { %v1781_v60 = vpop.eup %1780  ;;  %v1387_v23 = vadd.f32 1.0, %v1779_v59  ;;  %1784 = vpow2.f32 %v1330_v9  ;;  %v1379_v53 = vmul.f32 1.442695, %v1376_v25  ;;  %v1472_v29 = vmul.f32 %v2691_v43, %v2974_v51 }
 0x158   : > { %1786 = vrcp.f32 %v1338_v62  ;;  %v1436_v55 = vadd.f32 1.0, %v1781_v60  ;;  %v1381_v38 = vmul.f32 1.442695, %v1377_v57  ;;  %v1474_v56 = vsub.f32 0.0, %v1471_v3 }
 0x159   : > { %v1783_v14 = vpop.eup %1782  ;;  %1788 = vrcp.f32 %v1387_v23  ;;  %v1428_v50 = vmul.f32 1.442695, %v1425_v20  ;;  %v1475_v63 = vsub.f32 0.0, %v1472_v29  ;;  %v1430_v24 = vmul.f32 1.442695, %v1426_v44 }
 0x15a   : > { %1790 = vrcp.f32 %v1436_v55  ;;  %v1485_v7 = vadd.f32 1.0, %v1783_v14  ;;  %v1477_v52 = vmul.f32 1.442695, %v1474_v56  ;;  %v1408_v13 = vrot.slane %v1824_v42, %v3259_v6 }
 0x15b   : > { %1792 = vpow2.f32 %v1332_v45  ;;  %v1479_v1 = vmul.f32 1.442695, %v1475_v63  ;;  %v1359_v35 = vrot.slane %v1824_v42, %v3247_v31  ;;  %v1457_v5 = vrot.slane %v1824_v42, %v3252_v2 }
 0x15c   : > { %1794 = vrcp.f32 %v1485_v7  ;;  %v1506_v33 = vrot.slane %v1824_v42, %v3264_v10  ;;  %v1825_v7 = vld [vmem:[%s3333_s11] sm:$0xff] }
 0x15d   : > { %1796 = vpow2.f32 %v1379_v53  ;;  %v1449_v42 = vrot.slane %v1825_v7, %v3252_v2 }
 0x15e   : > { %1798 = vpow2.f32 %v1381_v38  ;;  %v1400_v38 = vrot.slane %v1825_v7, %v3259_v6 }
 0x15f   : > { %1800 = vpow2.f32 %v1428_v50  ;;  %v1404_v50 = vrot.slane %v1825_v7, %v3288_v11  ;;  %v1498_v11 = vrot.slane %v1825_v7, %v3264_v10 }
 0x160   : > { %1802 = vpow2.f32 %v1430_v24  ;;  %v1351_v24 = vrot.slane %v1825_v7, %v3247_v31 }
 0x161   : > { %1804 = vpow2.f32 %v1477_v52 }
 0x162   : > { %1806 = vpow2.f32 %v1479_v1 }
 0x164   : > { %v1785_v47 = vpop.eup %1784 }
 0x165   : > { %v1787_v43 = vpop.eup %1786  ;;  %v1336_v54 = vadd.f32 1.0, %v1785_v47 }
 0x166   : > { %v1789_v41 = vpop.eup %1788  ;;  %v1347_v4 = vmul.f32 %v1787_v43, %v2898_v36  ;;  %v1355_v43 = vrot.slane %v1825_v7, %v3256_v19 }
 0x167   : > { %v1791_v16 = vpop.eup %1790  ;;  %v1396_v58 = vmul.f32 %v1789_v41, %v2901_v32  ;;  %1808 = vrcp.f32 %v1336_v54 }
 0x168   : > { %v1793_v48 = vpop.eup %1792  ;;  %v1445_v37 = vmul.f32 %v1791_v16, %v2904_v27  ;;  %v1365_v36 = vadd.f32 %v1359_v35, %v1347_v4  ;;  %v1453_v16 = vrot.slane %v1825_v7, %v3279_v17 }
 0x169   : > { %v1795_v28 = vpop.eup %1794  ;;  %v1414_v39 = vadd.f32 %v1408_v13, %v1396_v58  ;;  %v1337_v26 = vadd.f32 1.0, %v1793_v48 }
 0x16a   : > { %v1797_v46 = vpop.eup %1796  ;;  %v1494_v8 = vmul.f32 %v1795_v28, %v2919_v61  ;;  %v1463_v25 = vadd.f32 %v1457_v5, %v1445_v37 }
 0x16b   : > { %v1799_v12 = vpop.eup %1798  ;;  %v1518_v32 = vrot.slane %v1414_v39, 7  ;;  %v1385_v30 = vadd.f32 1.0, %v1797_v46  ;;  %1810 = vrcp.f32 %v1337_v26 }
 0x16c   : > { %v1801_v9 = vpop.eup %1800  ;;  %v1512_v59 = vadd.f32 %v1506_v33, %v1494_v8  ;;  %v1386_v62 = vadd.f32 1.0, %v1799_v12 }
 0x16d   : > { %v1803_v27 = vpop.eup %1802  ;;  %v1534_v57 = vsel %vm1531_vm8, %v1365_v36, %v1518_v32  ;;  %1812 = vrcp.f32 %v1385_v30  ;;  %v1434_v60 = vadd.f32 1.0, %v1801_v9 }
 0x16e   : > { %v1805_v23 = vpop.eup %1804  ;;  %v1527_v61 = vrot.slane %v1512_v59, 7  ;;  %v1538_v45 = vsel %vm1535_vm9, %v1534_v57, %v1463_v25  ;;  %1814 = vrcp.f32 %v1386_v62  ;;  %v1435_v20 = vadd.f32 1.0, %v1803_v27 }
 0x16f   : > { %v1807_v55 = vpop.eup %1806  ;;  %1816 = vrcp.f32 %v1434_v60  ;;  %v1483_v44 = vadd.f32 1.0, %v1805_v23 }
 0x170   : > { %v1542_v3 = vsel %vm1539_vm10, %v1538_v45, %v1527_v61  ;;  %1818 = vrcp.f32 %v1435_v20  ;;  %v1484_v14 = vadd.f32 1.0, %v1807_v55 }
 0x171   : > { %1548 = vst [vmem:[%s2995_s14 + $0x8] sm:$0xf] %v1542_v3  ;;  %1820 = vrcp.f32 %v1483_v44 }
 0x172   : > { %1822 = vrcp.f32 %v1484_v14 }
 0x174   : > { %v1809_v53 = vpop.eup %1808 }
 0x175   : > { %v1345_v52 = vmul.f32 %v1809_v53, %v2941_v34 }
 0x177   : > { %v1363_v2 = vadd.f32 %v1351_v24, %v1345_v52 }
 0x178   : > { %v1811_v29 = vpop.eup %1810 }
 0x179   : > { %v1346_v13 = vmul.f32 %v1811_v29, %v2944_v18 }
 0x17a   : > { %v1813_v56 = vpop.eup %1812 }
 0x17b   : > { %v1815_v63 = vpop.eup %1814  ;;  %v1394_v1 = vmul.f32 %v1813_v56, %v2947_v0  ;;  %v1502_v0 = vrot.slane %v1825_v7, %v3295_v22 }
 0x17c   : > { %v1817_v47 = vpop.eup %1816  ;;  %v1395_v41 = vmul.f32 %v1815_v63, %v2952_v49  ;;  %v1364_v49 = vadd.f32 %v1355_v43, %v1346_v13 }
 0x17d   : > { %v1819_v6 = vpop.eup %1818  ;;  %v1412_v35 = vadd.f32 %v1400_v38, %v1394_v1  ;;  %v1443_v31 = vmul.f32 %v1817_v47, %v2959_v21 }
 0x17e   : > { %v1821_v34 = vpop.eup %1820  ;;  %v1413_v4 = vadd.f32 %v1404_v50, %v1395_v41  ;;  %v1444_v19 = vmul.f32 %v1819_v6, %v2962_v15 }
 0x17f   : > { %v1823_v58 = vpop.eup %1822  ;;  %v1492_v18 = vmul.f32 %v1821_v34, %v2971_v40  ;;  %v1516_v54 = vrot.slane %v1412_v35, 7  ;;  %v1461_v48 = vadd.f32 %v1449_v42, %v1443_v31 }
 0x180   : > { %v1493_v17 = vmul.f32 %v1823_v58, %v2974_v51  ;;  %v1517_v10 = vrot.slane %v1413_v4, 7  ;;  %v1462_v5 = vadd.f32 %v1453_v16, %v1444_v19 }
 0x181   : > { %v1510_v33 = vadd.f32 %v1498_v11, %v1492_v18  ;;  %v1532_v21 = vsel %vm1531_vm8, %v1363_v2, %v1516_v54 }
 0x182   : > { %v1511_v37 = vadd.f32 %v1502_v0, %v1493_v17  ;;  %v1533_v22 = vsel %vm1531_vm8, %v1364_v49, %v1517_v10  ;;  %v1536_v15 = vsel %vm1535_vm9, %v1532_v21, %v1461_v48 }
 0x183   : > { %v1525_v28 = vrot.slane %v1510_v33, 7  ;;  %v1537_v39 = vsel %vm1535_vm9, %v1533_v22, %v1462_v5 }
 0x184   : > { %v1526_v40 = vrot.slane %v1511_v37, 7 }
 0x185   : > { %v1540_v26 = vsel %vm1539_vm10, %v1536_v15, %v1525_v28 }
 0x186   : > { %v1541_v46 = vsel %vm1539_vm10, %v1537_v39, %v1526_v40 }
 0x187   : > { %v1545_v8 = vcombine.low %v1540_v26, %v1541_v46 }
 0x189   : > { %1547 = vst [vmem:[%s2995_s14] sm:$0xff] %v1545_v8 }
 0x18a PF: > { %s3337_s27 = sld [smem:[#allocation9_spill]] }
 0x190   : > { %s16_s15 = sadd.s32 1, %s3337_s27  }
 0x191   : > { %p13_p5 = scmp.ge.s32.totalorder %s16_s15, 4  }
 0x193   :  { %15 = sbr.rel (!%p13_p5) target bundleno = 8 (0x8), region = 79 }
 0x198   :  { %1570 = vsyncpa [#allocation3], 1 }
 0x199   :  { %1572 = vsyncpa [#allocation3 + $0x1], 1 }
 0x19a   :  { %1573 = vsyncpa [#allocation5], 1 }

</bundles_post_ra>
